<compile_context>
chip_gen: v7x
topology: tpu7x:2x2x1
jax: 0.10.0
libtpu: 0.0.40
codegen_flags: <defaults>
</compile_context>

<pallas_src>
import functools

import jax
import jax.numpy as jnp
from jax.experimental import pallas as pl
from jax.experimental.pallas import tpu as pltpu

IN_FEATURES = 28 * 28            # 784
IN_PAD = 896                     # 7 * 128 : lane-aligned K for the first matmul
HIDDEN = 512
OUT_FEATURES = 10
OUT_PAD = 128                    # lane-dense output block; wrapper slices [:, :10]
U_WIDTH = 3 * HIDDEN + OUT_PAD   # 1664 = 13 * 128 : concatenated dropout uniforms


def _round_up(x, m):
    return (x + m - 1) // m * m


def _mlp_kernel(x_ref,
                w1_ref, b1_ref, w2_ref, b2_ref, w3_ref, b3_ref, w4_ref, b4_ref,
                *rest, dropout_p, apply_dropout):
    if apply_dropout:
        u_ref, o_ref = rest
    else:
        (o_ref,) = rest

    def linear(h, w_ref, b_ref, u_lo, u_hi):
        # bf16 x bf16 -> f32 accumulation on the MXU.
        out = jnp.dot(h.astype(jnp.bfloat16), w_ref[...],
                      preferred_element_type=jnp.float32)
        out = out + b_ref[...]                        # (1, N) broadcasts over batch
        if apply_dropout:
            # 1/(1-p) is already folded into W and b -> just mask.
            keep = u_ref[:, u_lo:u_hi] >= jnp.float32(dropout_p)
            out = jnp.where(keep, out, 0.0)
        return out

    h = x_ref[...]                                    # (TB, 896) bf16
    h = linear(h, w1_ref, b1_ref, 0, HIDDEN)
    h = linear(h, w2_ref, b2_ref, HIDDEN, 2 * HIDDEN)
    h = linear(h, w3_ref, b3_ref, 2 * HIDDEN, 3 * HIDDEN)
    h = linear(h, w4_ref, b4_ref, 3 * HIDDEN, 3 * HIDDEN + OUT_PAD)
    o_ref[...] = h.astype(o_ref.dtype)


def _prep_params(params, *, dropout_p, training):
    """Pad to lane-aligned shapes, cast W to bf16, fold dropout scale in."""
    apply_dropout = training and dropout_p > 0.0
    scale = 1.0 / (1.0 - dropout_p) if apply_dropout else 1.0
    flat = []
    n_layers = len(params)
    for li, (w, b) in enumerate(params):
        w = jnp.asarray(w, jnp.float32) * scale
        b = jnp.asarray(b, jnp.float32).reshape(1, -1) * scale
        if li == 0:
            # zero-pad K: 784 -> 896 (extra input columns are zero, so no-op).
            w = jnp.pad(w, ((0, IN_PAD - w.shape[0]), (0, 0)))
        if li == n_layers - 1:
            # zero-pad N: 10 -> 128 for a lane-dense output store.
            w = jnp.pad(w, ((0, 0), (0, OUT_PAD - w.shape[1])))
            b = jnp.pad(b, ((0, 0), (0, OUT_PAD - b.shape[1])))
        flat.append(w.astype(jnp.bfloat16))
        flat.append(b)                               # biases stay f32
    return flat


def net_forward(x, params, *, key=None, dropout_p=0.5, training=False,
                block_b=256):
    """Forward pass of Net as a single batch-tiled Pallas TPU kernel.

    x:      (B, 28, 28), (B, 1, 28, 28) or (B, 784) float32
    params: list of 4 (W, b) pairs with W of shape (in, out), b of shape (out,)
    """
    if training:
        assert 0.0 <= dropout_p < 1.0, "dropout_p must be in [0, 1)"
    apply_dropout = training and dropout_p > 0.0

    x = jnp.asarray(x, jnp.float32).reshape(-1, IN_FEATURES)   # x.view(-1, 784)
    B = x.shape[0]

    # Batch tile: multiple of 16 (bf16 sublane packing), capped at block_b.
    tb = min(_round_up(block_b, 16), _round_up(B, 16))
    b_pad = _round_up(B, tb)
    num_tiles = b_pad // tb

    xp = jnp.pad(x, ((0, b_pad - B), (0, IN_PAD - IN_FEATURES)))
    xp = xp.astype(jnp.bfloat16)                      # halves input DMA

    flat_params = _prep_params(params, dropout_p=dropout_p, training=training)

    inputs = [xp] + flat_params
    in_specs = [pl.BlockSpec((tb, IN_PAD), lambda i: (i, 0))]
    for p in flat_params:
        # Constant index_map -> parameters stay resident in VMEM across tiles.
        in_specs.append(pl.BlockSpec(p.shape, lambda i: (0, 0)))

    if apply_dropout:
        if key is None:
            key = jax.random.PRNGKey(0)
        u = jax.random.uniform(key, (b_pad, U_WIDTH), jnp.float32)
        inputs.append(u)
        in_specs.append(pl.BlockSpec((tb, U_WIDTH), lambda i: (i, 0)))

    kernel = functools.partial(
        _mlp_kernel, dropout_p=dropout_p, apply_dropout=apply_dropout)

    out = pl.pallas_call(
        kernel,
        out_shape=jax.ShapeDtypeStruct((b_pad, OUT_PAD), jnp.float32),
        grid=(num_tiles,),
        in_specs=in_specs,
        out_specs=pl.BlockSpec((tb, OUT_PAD), lambda i: (i, 0)),
        compiler_params=pltpu.CompilerParams(
            dimension_semantics=("parallel",),        # megacore batch sharding
            vmem_limit_bytes=32 * 1024 * 1024,        # weights + 2x-buffered tiles
        ),
    )(*inputs)

    return out[:B, :OUT_FEATURES]


def init_params(key, layer_sizes=(IN_FEATURES, HIDDEN, HIDDEN, HIDDEN, OUT_FEATURES)):
    """Deterministic PyTorch-style init: U(-1/sqrt(fan_in), 1/sqrt(fan_in))."""
    params = []
    for fan_in, fan_out in zip(layer_sizes[:-1], layer_sizes[1:]):
        key, kw, kb = jax.random.split(key, 3)
        bound = 1.0 / (fan_in ** 0.5)
        w = jax.random.uniform(kw, (fan_in, fan_out), jnp.float32, -bound, bound)
        b = jax.random.uniform(kb, (fan_out,), jnp.float32, -bound, bound)
        params.append((w, b))
    return params


def _reference_eval(x, params):
    """Pure-JAX reference for the eval-mode forward, mirroring the kernel's
    bf16-matmul / f32-accumulate numerics."""
    h = jnp.asarray(x, jnp.float32).reshape(-1, IN_FEATURES)
    for (w, b) in params:
        h = jnp.dot(h.astype(jnp.bfloat16),
                    jnp.asarray(w, jnp.float32).astype(jnp.bfloat16),
                    preferred_element_type=jnp.float32)
        h = h + jnp.asarray(b, jnp.float32)
    return h


if __name__ == "__main__":
    key = jax.random.PRNGKey(0)
    key, kx, kd = jax.random.split(key, 3)

    B = 8
    x = jax.random.normal(kx, (B, 28, 28), jnp.float32)
    params = init_params(key)

    # Eval-mode forward (dropout is identity) -> deterministic, check vs reference.
    out_eval = net_forward(x, params, training=False)
    out_eval = jax.block_until_ready(out_eval)
    assert out_eval.shape == (B, 10)
    ref = _reference_eval(x, params)
    assert jnp.allclose(out_eval, ref, rtol=1e-2, atol=1e-3), "mismatch vs reference"

    # Training-mode forward (dropout p=0.5, deterministic key).
    out_train = net_forward(x, params, key=kd, dropout_p=0.5, training=True)
    out_train = jax.block_until_ready(out_train)
    assert out_train.shape == (B, 10)
    assert bool(jnp.all(jnp.isfinite(out_train)))

    print("KERNEL_OK")
</pallas_src>

<mosaic_0001>
module attributes {stable_mosaic.version = 11 : i64} {
  func.func @_mlp_kernel(%arg0: i32, %arg1: memref<16x896xbf16, #tpu.memory_space<vmem>>, %arg2: memref<896x512xbf16, #tpu.memory_space<vmem>>, %arg3: memref<1x512xf32, #tpu.memory_space<vmem>>, %arg4: memref<512x512xbf16, #tpu.memory_space<vmem>>, %arg5: memref<1x512xf32, #tpu.memory_space<vmem>>, %arg6: memref<512x512xbf16, #tpu.memory_space<vmem>>, %arg7: memref<1x512xf32, #tpu.memory_space<vmem>>, %arg8: memref<512x128xbf16, #tpu.memory_space<vmem>>, %arg9: memref<1x128xf32, #tpu.memory_space<vmem>>, %arg10: memref<16x128xf32, #tpu.memory_space<vmem>>) attributes {dimension_semantics = [#tpu.dimension_semantics<parallel>], iteration_bounds = array<i64: 1>, scalar_prefetch = 0 : i64, scratch_operands = 0 : i64, tpu.core_type = #tpu.core_type<tc>, window_params = [{transform_indices = @transform_0, window_bounds = array<i64: 16, 896>}, {pipeline_mode = #tpu.pipeline_mode<synchronous>, transform_indices = @transform_1, window_bounds = array<i64: 896, 512>}, {pipeline_mode = #tpu.pipeline_mode<synchronous>, transform_indices = @transform_2, window_bounds = array<i64: 1, 512>}, {pipeline_mode = #tpu.pipeline_mode<synchronous>, transform_indices = @transform_3, window_bounds = array<i64: 512, 512>}, {pipeline_mode = #tpu.pipeline_mode<synchronous>, transform_indices = @transform_4, window_bounds = array<i64: 1, 512>}, {pipeline_mode = #tpu.pipeline_mode<synchronous>, transform_indices = @transform_5, window_bounds = array<i64: 512, 512>}, {pipeline_mode = #tpu.pipeline_mode<synchronous>, transform_indices = @transform_6, window_bounds = array<i64: 1, 512>}, {pipeline_mode = #tpu.pipeline_mode<synchronous>, transform_indices = @transform_7, window_bounds = array<i64: 512, 128>}, {pipeline_mode = #tpu.pipeline_mode<synchronous>, transform_indices = @transform_8, window_bounds = array<i64: 1, 128>}, {transform_indices = @transform_9, window_bounds = array<i64: 16, 128>}]} {
    %c0 = arith.constant 0 : index
    %c0_0 = arith.constant 0 : index
    %0 = vector.load %arg1[%c0, %c0_0] : memref<16x896xbf16, #tpu.memory_space<vmem>>, vector<16x896xbf16>
    %c0_1 = arith.constant 0 : index
    %c0_2 = arith.constant 0 : index
    %1 = vector.load %arg2[%c0_1, %c0_2] : memref<896x512xbf16, #tpu.memory_space<vmem>>, vector<896x512xbf16>
    %cst = arith.constant dense<0.000000e+00> : vector<16x512xf32>
    %2 = tpu.matmul %0, %1, %cst {dimension_numbers = #tpu.dot_dimension_numbers<[1], [0], [0], [1], [0, 0, 1, 1], [], []>} : vector<16x896xbf16>, vector<896x512xbf16>, vector<16x512xf32> -> vector<16x512xf32>
    %c0_3 = arith.constant 0 : index
    %c0_4 = arith.constant 0 : index
    %3 = vector.load %arg3[%c0_3, %c0_4] : memref<1x512xf32, #tpu.memory_space<vmem>>, vector<1x512xf32>
    %4 = vector.broadcast %3 : vector<1x512xf32> to vector<16x512xf32>
    %5 = arith.addf %2, %4 : vector<16x512xf32>
    %6 = arith.truncf %5 : vector<16x512xf32> to vector<16x512xbf16>
    %c0_5 = arith.constant 0 : index
    %c0_6 = arith.constant 0 : index
    %7 = vector.load %arg4[%c0_5, %c0_6] : memref<512x512xbf16, #tpu.memory_space<vmem>>, vector<512x512xbf16>
    %cst_7 = arith.constant dense<0.000000e+00> : vector<16x512xf32>
    %8 = tpu.matmul %6, %7, %cst_7 {dimension_numbers = #tpu.dot_dimension_numbers<[1], [0], [0], [1], [0, 0, 1, 1], [], []>} : vector<16x512xbf16>, vector<512x512xbf16>, vector<16x512xf32> -> vector<16x512xf32>
    %c0_8 = arith.constant 0 : index
    %c0_9 = arith.constant 0 : index
    %9 = vector.load %arg5[%c0_8, %c0_9] : memref<1x512xf32, #tpu.memory_space<vmem>>, vector<1x512xf32>
    %10 = vector.broadcast %9 : vector<1x512xf32> to vector<16x512xf32>
    %11 = arith.addf %8, %10 : vector<16x512xf32>
    %12 = arith.truncf %11 : vector<16x512xf32> to vector<16x512xbf16>
    %c0_10 = arith.constant 0 : index
    %c0_11 = arith.constant 0 : index
    %13 = vector.load %arg6[%c0_10, %c0_11] : memref<512x512xbf16, #tpu.memory_space<vmem>>, vector<512x512xbf16>
    %cst_12 = arith.constant dense<0.000000e+00> : vector<16x512xf32>
    %14 = tpu.matmul %12, %13, %cst_12 {dimension_numbers = #tpu.dot_dimension_numbers<[1], [0], [0], [1], [0, 0, 1, 1], [], []>} : vector<16x512xbf16>, vector<512x512xbf16>, vector<16x512xf32> -> vector<16x512xf32>
    %c0_13 = arith.constant 0 : index
    %c0_14 = arith.constant 0 : index
    %15 = vector.load %arg7[%c0_13, %c0_14] : memref<1x512xf32, #tpu.memory_space<vmem>>, vector<1x512xf32>
    %16 = vector.broadcast %15 : vector<1x512xf32> to vector<16x512xf32>
    %17 = arith.addf %14, %16 : vector<16x512xf32>
    %18 = arith.truncf %17 : vector<16x512xf32> to vector<16x512xbf16>
    %c0_15 = arith.constant 0 : index
    %c0_16 = arith.constant 0 : index
    %19 = vector.load %arg8[%c0_15, %c0_16] : memref<512x128xbf16, #tpu.memory_space<vmem>>, vector<512x128xbf16>
    %cst_17 = arith.constant dense<0.000000e+00> : vector<16x128xf32>
    %20 = tpu.matmul %18, %19, %cst_17 {dimension_numbers = #tpu.dot_dimension_numbers<[1], [0], [0], [1], [0, 0, 1, 1], [], []>} : vector<16x512xbf16>, vector<512x128xbf16>, vector<16x128xf32> -> vector<16x128xf32>
    %c0_18 = arith.constant 0 : index
    %c0_19 = arith.constant 0 : index
    %21 = vector.load %arg9[%c0_18, %c0_19] : memref<1x128xf32, #tpu.memory_space<vmem>>, vector<1x128xf32>
    %22 = vector.broadcast %21 : vector<1x128xf32> to vector<16x128xf32>
    %23 = arith.addf %20, %22 : vector<16x128xf32>
    %c0_20 = arith.constant 0 : index
    %c0_21 = arith.constant 0 : index
    %24 = vector.load %arg10[%c0_20, %c0_21] : memref<16x128xf32, #tpu.memory_space<vmem>>, vector<16x128xf32>
    tpu.vector_store %arg10[%c0_20, %c0_21], %23 {strides = array<i32>} : memref<16x128xf32, #tpu.memory_space<vmem>>, vector<16x128xf32>,
    return
  }
  func.func @transform_0(%arg0: i32) -> (i32, i32) {
    %c0_i32 = arith.constant 0 : i32
    %c0_i32_0 = arith.constant 0 : i32
    return %arg0, %c0_i32 : i32, i32
  }
  func.func @transform_1(%arg0: i32) -> (i32, i32) {
    %c0_i32 = arith.constant 0 : i32
    %c0_i32_0 = arith.constant 0 : i32
    %c0_i32_1 = arith.constant 0 : i32
    return %c0_i32, %c0_i32_0 : i32, i32
  }
  func.func @transform_2(%arg0: i32) -> (i32, i32) {
    %c0_i32 = arith.constant 0 : i32
    %c0_i32_0 = arith.constant 0 : i32
    %c0_i32_1 = arith.constant 0 : i32
    return %c0_i32, %c0_i32_0 : i32, i32
  }
  func.func @transform_3(%arg0: i32) -> (i32, i32) {
    %c0_i32 = arith.constant 0 : i32
    %c0_i32_0 = arith.constant 0 : i32
    %c0_i32_1 = arith.constant 0 : i32
    return %c0_i32, %c0_i32_0 : i32, i32
  }
  func.func @transform_4(%arg0: i32) -> (i32, i32) {
    %c0_i32 = arith.constant 0 : i32
    %c0_i32_0 = arith.constant 0 : i32
    %c0_i32_1 = arith.constant 0 : i32
    return %c0_i32, %c0_i32_0 : i32, i32
  }
  func.func @transform_5(%arg0: i32) -> (i32, i32) {
    %c0_i32 = arith.constant 0 : i32
    %c0_i32_0 = arith.constant 0 : i32
    %c0_i32_1 = arith.constant 0 : i32
    return %c0_i32, %c0_i32_0 : i32, i32
  }
  func.func @transform_6(%arg0: i32) -> (i32, i32) {
    %c0_i32 = arith.constant 0 : i32
    %c0_i32_0 = arith.constant 0 : i32
    %c0_i32_1 = arith.constant 0 : i32
    return %c0_i32, %c0_i32_0 : i32, i32
  }
  func.func @transform_7(%arg0: i32) -> (i32, i32) {
    %c0_i32 = arith.constant 0 : i32
    %c0_i32_0 = arith.constant 0 : i32
    %c0_i32_1 = arith.constant 0 : i32
    return %c0_i32, %c0_i32_0 : i32, i32
  }
  func.func @transform_8(%arg0: i32) -> (i32, i32) {
    %c0_i32 = arith.constant 0 : i32
    %c0_i32_0 = arith.constant 0 : i32
    %c0_i32_1 = arith.constant 0 : i32
    return %c0_i32, %c0_i32_0 : i32, i32
  }
  func.func @transform_9(%arg0: i32) -> (i32, i32) {
    %c0_i32 = arith.constant 0 : i32
    %c0_i32_0 = arith.constant 0 : i32
    return %arg0, %c0_i32 : i32, i32
  }
}

</mosaic_0001>

<bundles_post_ra>
// kernel: tpu_custom_call.1
= control target key start
LH: loop header
LB: loop body
LE: loop exit
PB: predicated region body
PF: predicated region fallthrough
CT: control target
= control target key end

     0   :  { %14 = vsyncpa [#allocation3], 0  ;;  %s5889_s0 = inlined_call_operand.hbm [shape: bf16[16,896], index: 0, kind: input, shape index: {}]   ;;  %s5890_s1 = inlined_call_operand.hbm [shape: bf16[896,512], index: 1, kind: input, shape index: {}]   ;;  %s5891_s2 = inlined_call_operand.vmem [shape: f32[1,512], index: 2, kind: input, shape index: {}]   ;;  %s5892_s3 = inlined_call_operand.hbm [shape: bf16[512,512], index: 3, kind: input, shape index: {}]   ;;  %s5893_s4 = inlined_call_operand.vmem [shape: f32[1,512], index: 4, kind: input, shape index: {}]   ;;  %s5894_s5 = inlined_call_operand.hbm [shape: bf16[512,512], index: 5, kind: input, shape index: {}]   ;;  %s5895_s6 = inlined_call_operand.vmem [shape: f32[1,512], index: 6, kind: input, shape index: {}]   ;;  %s5896_s7 = inlined_call_operand.hbm [shape: bf16[512,128], index: 7, kind: input, shape index: {}]   ;;  %s5897_s8 = inlined_call_operand.vmem [shape: f32[1,128], index: 8, kind: input, shape index: {}]   ;;  %s5898_s9 = inlined_call_operand.hbm [shape: f32[16,128], index: 9, kind: output, shape index: {}]  }
   0x1   :  { %15 = vsyncpa [#allocation6], 0 }
   0x2   :  { %16 = vsyncpa [#allocation9], 0 }
   0x3   :  { %17 = vsyncpa [#allocation4], 0  ;;  %s5703_s30 = smov [#allocation5]   ;;  %s5563_s13 = scalar_lea.hbm %s5890_s1, 28672 }
   0x4   :  { %s35_s10 = sshll.u32 %s5703_s30, 4  ;;  %p5564_p0 = scmp.ne.s32.totalorder %s5890_s1, %s5563_s13  ;;  %s36_s10 = int_to_ptr.vmem [resolvable:$true] %s35_s10 }
   0x5   :  { %p5567_p1 = scmp.lt.u32.totalorder %s5563_s13, %s5890_s1 }
   0x7   :  { %p5569_p2 = pnand %p5567_p1, %p5564_p0 }
   0x9   :  { %5572 = shalt.err (!%p5569_p2)
}
   0xa   :  { %s5573_s18 = scalar_lea.vmem %s36_s10, 28672  ;;  %p5578_p4 = scmp.lt.s32.totalorder %s36_s10, %s36_s10 }
   0xb   :  { %p5574_p3 = scmp.ne.s32.totalorder %s36_s10, %s5573_s18  ;;  %p5579_p5 = scmp.lt.s32.totalorder %s5573_s18, %s5573_s18 }
   0xd   :  { %p5580_p6 = por %p5579_p5, %p5578_p4 }
   0xf   :  { %p5581_p7 = pnand %p5580_p6, %p5574_p3 }
  0x11   :  { %5584 = shalt.err (!%p5581_p7)
}
  0x12   :  { %s5704_s19 = smov 256   ;;  %s5705_s20 = smov 16  }
  0x13   :  { %41 = dma.hbm_to_vmem [thread:$0]  %s5890_s1, 28672, %s36_s10, [#allocation6], %s5704_s19, %s5704_s19, %s5705_s20  }
  0x14   :  { %s5706_s23 = smov [#allocation8]   ;;  %s5707_s25 = smov [#allocation2]  }
  0x15   :  { %s63_s24 = sshll.u32 %s5706_s23, 4  ;;  %s23_s26 = sshll.u32 %s5707_s25, 4  ;;  %s64_s24 = int_to_ptr.vmem [resolvable:$true] %s63_s24  ;;  %s24_s26 = int_to_ptr.vmem [resolvable:$true] %s23_s26 }
  0x16   :  { %s5585_s29 = scalar_lea.hbm %s5894_s5, 16384 }
  0x17   :  { %p5586_p8 = scmp.ne.s32.totalorder %s5894_s5, %s5585_s29  ;;  %p5589_p9 = scmp.lt.u32.totalorder %s5585_s29, %s5894_s5 }
  0x19   :  { %p5591_p10 = pnand %p5589_p9, %p5586_p8 }
  0x1b   :  { %5594 = shalt.err (!%p5591_p10)
}
  0x1c   :  { %s5595_s1 = scalar_lea.vmem %s64_s24, 16384  ;;  %p5600_p12 = scmp.lt.s32.totalorder %s64_s24, %s64_s24 }
  0x1d   :  { %p5596_p11 = scmp.ne.s32.totalorder %s64_s24, %s5595_s1  ;;  %p5601_p13 = scmp.lt.s32.totalorder %s5595_s1, %s5595_s1 }
  0x1f   :  { %p5602_p0 = por %p5601_p13, %p5600_p12 }
  0x21   :  { %p5603_p1 = pnand %p5602_p0, %p5596_p11 }
  0x23   :  { %5606 = shalt.err (!%p5603_p1)
}
  0x24   :  { %69 = dma.hbm_to_vmem [thread:$0]  %s5894_s5, 16384, %s64_s24, [#allocation9], %s5704_s19, %s5704_s19, %s5705_s20  }
  0x25   :  { %s5607_s17 = scalar_lea.hbm %s5889_s0, 896 }
  0x26   :  { %p5608_p2 = scmp.ne.s32.totalorder %s5889_s0, %s5607_s17  ;;  %p5611_p3 = scmp.lt.u32.totalorder %s5607_s17, %s5889_s0 }
  0x28   :  { %p5613_p4 = pnand %p5611_p3, %p5608_p2 }
  0x2a   :  { %5616 = shalt.err (!%p5613_p4)
}
  0x2b   :  { %s5617_s25 = scalar_lea.vmem %s24_s26, 896  ;;  %p5622_p6 = scmp.lt.s32.totalorder %s24_s26, %s24_s26 }
  0x2c   :  { %p5618_p5 = scmp.ne.s32.totalorder %s24_s26, %s5617_s25  ;;  %p5623_p7 = scmp.lt.s32.totalorder %s5617_s25, %s5617_s25 }
  0x2e   :  { %p5624_p8 = por %p5623_p7, %p5622_p6 }
  0x30   :  { %p5625_p9 = pnand %p5624_p8, %p5618_p5 }
  0x32   :  { %5628 = shalt.err (!%p5625_p9)
}
  0x33   :  { %s5708_s5 = smov 448   ;;  %s5709_s24 = smov 28  }
  0x34   :  { %29 = dma.hbm_to_vmem [thread:$0]  %s5889_s0, 896, %s24_s26, [#allocation3], %s5708_s5, %s5708_s5, %s5709_s24  }
  0x35   :  { %s5710_s29 = smov [#allocation7]   ;;  %s5711_s11 = smov [#allocation10]  }
  0x36   :  { %s49_s30 = sshll.u32 %s5710_s29, 4  ;;  %s77_s12 = sshll.u32 %s5711_s11, 4  ;;  %s50_s30 = int_to_ptr.vmem [resolvable:$true] %s49_s30  ;;  %s78_s12 = int_to_ptr.vmem [resolvable:$true] %s77_s12 }
  0x37   :  { %s5629_s10 = scalar_lea.hbm %s5892_s3, 16384 }
  0x38   :  { %p5630_p10 = scmp.ne.s32.totalorder %s5892_s3, %s5629_s10  ;;  %p5633_p11 = scmp.lt.u32.totalorder %s5629_s10, %s5892_s3 }
  0x3a   :  { %p5635_p12 = pnand %p5633_p11, %p5630_p10 }
  0x3c   :  { %5638 = shalt.err (!%p5635_p12)
}
  0x3d   :  { %s5639_s0 = scalar_lea.vmem %s50_s30, 16384  ;;  %p5644_p0 = scmp.lt.s32.totalorder %s50_s30, %s50_s30 }
  0x3e   :  { %p5640_p13 = scmp.ne.s32.totalorder %s50_s30, %s5639_s0  ;;  %p5645_p1 = scmp.lt.s32.totalorder %s5639_s0, %s5639_s0 }
  0x40   :  { %p5646_p2 = por %p5645_p1, %p5644_p0 }
  0x42   :  { %p5647_p3 = pnand %p5646_p2, %p5640_p13 }
  0x44   :  { %5650 = shalt.err (!%p5647_p3)
}
  0x45   :  { %55 = dma.hbm_to_vmem [thread:$0]  %s5892_s3, 16384, %s50_s30, [#allocation6], %s5704_s19, %s5704_s19, %s5705_s20  }
  0x46   :  { %s5651_s23 = scalar_lea.hbm %s5896_s7, 4096 }
  0x47   :  { %p5652_p4 = scmp.ne.s32.totalorder %s5896_s7, %s5651_s23  ;;  %p5655_p5 = scmp.lt.u32.totalorder %s5651_s23, %s5896_s7 }
  0x49   :  { %p5657_p6 = pnand %p5655_p5, %p5652_p4 }
  0x4b   :  { %5660 = shalt.err (!%p5657_p6)
}
  0x4c   :  { %s5661_s28 = scalar_lea.vmem %s78_s12, 4096  ;;  %p5666_p8 = scmp.lt.s32.totalorder %s78_s12, %s78_s12 }
  0x4d   :  { %p5662_p7 = scmp.ne.s32.totalorder %s78_s12, %s5661_s28  ;;  %p5667_p9 = scmp.lt.s32.totalorder %s5661_s28, %s5661_s28 }
  0x4f   :  { %p5668_p10 = por %p5667_p9, %p5666_p8 }
  0x51   :  { %p5669_p11 = pnand %p5668_p10, %p5662_p7 }
  0x53   :  { %5672 = shalt.err (!%p5669_p11)
}
  0x54   :  { %s5712_s3 = smov 64   ;;  %s5713_s19 = smov 4  }
  0x55   :  { %83 = dma.hbm_to_vmem [thread:$0]  %s5896_s7, 4096, %s78_s12, [#allocation9], %s5712_s3, %s5712_s3, %s5713_s19  }
  0x56   :  { %5695 = dma.done.wait [#allocation3], 896  }
  0x57   :  { %5696 = vsyncadd [#allocation3], 4294966400 }
  0x58   :  { %5697 = dma.done.wait [#allocation6], 45056  }
  0x59   :  { %5698 = vsyncadd [#allocation6], 4294922240 }
  0x5a   :  { %5699 = dma.done.wait [#allocation9], 20480  }
  0x5b   :  { %5700 = vsyncadd [#allocation9], 4294946816  ;;  %v4801_v0 = vld [vmem:[#allocation5 + $0x4] ss:$16 sps:$4 sm:$0xff]   ;;  %v4803_v1 = vld [vmem:[#allocation5 + $0xc] ss:$16 sps:$4 sm:$0xff]  }
  0x5c   :  { %1512 = vmatprep.subr.bf16.mxu0 %v4801_v0  ;;  %v4805_v2 = vld [vmem:[#allocation5] ss:$16 sps:$4 sm:$0xff]   ;;  %v4806_v3 = vld [vmem:[#allocation5 + $0x8] ss:$16 sps:$4 sm:$0xff]   ;;  %1684 = vmatprep.subr.bf16.mxu1 %v4803_v1  ;;  %v4807_v4 = vld [vmem:[#allocation5 + $0x24] ss:$16 sps:$4 sm:$0xff]  }
  0x5d   :  { %1513 = vmatpush1.bf16.msra.mxu0 %v4805_v2  ;;  %1685 = vmatpush1.bf16.msra.mxu1 %v4806_v3  ;;  %v4809_v5 = vld [vmem:[#allocation5 + $0x2c] ss:$16 sps:$4 sm:$0xff]   ;;  %v4811_v6 = vld [vmem:[#allocation5 + $0x20] ss:$16 sps:$4 sm:$0xff]   ;;  %v4812_v7 = vld [vmem:[#allocation5 + $0x28] ss:$16 sps:$4 sm:$0xff]  }
  0x5e   :  { %1514 = vmatprep.subr.bf16.mxu0 %v4807_v4  ;;  %1686 = vmatprep.subr.bf16.mxu1 %v4809_v5  ;;  %v4813_v8 = vld [vmem:[#allocation5 + $0x44] ss:$16 sps:$4 sm:$0xff]   ;;  %v4815_v9 = vld [vmem:[#allocation5 + $0x4c] ss:$16 sps:$4 sm:$0xff]   ;;  %v4817_v10 = vld [vmem:[#allocation5 + $0x40] ss:$16 sps:$4 sm:$0xff]  }
  0x5f   :  { %v4818_v11 = vld [vmem:[#allocation5 + $0x48] ss:$16 sps:$4 sm:$0xff]   ;;  %v4819_v12 = vld [vmem:[#allocation5 + $0x64] ss:$16 sps:$4 sm:$0xff]   ;;  %v4821_v13 = vld [vmem:[#allocation5 + $0x6c] ss:$16 sps:$4 sm:$0xff]  }
  0x60   :  { %v4823_v14 = vld [vmem:[#allocation5 + $0x60] ss:$16 sps:$4 sm:$0xff]   ;;  %v4824_v15 = vld [vmem:[#allocation5 + $0x68] ss:$16 sps:$4 sm:$0xff]   ;;  %v4825_v16 = vld [vmem:[#allocation5 + $0x84] ss:$16 sps:$4 sm:$0xff]  }
  0x61   :  { %1515 = vmatpush1.bf16.msra.mxu0 %v4811_v6  ;;  %1687 = vmatpush1.bf16.msra.mxu1 %v4812_v7  ;;  %v4827_v17 = vld [vmem:[#allocation5 + $0x8c] ss:$16 sps:$4 sm:$0xff]   ;;  %v4829_v18 = vld [vmem:[#allocation5 + $0x80] ss:$16 sps:$4 sm:$0xff]   ;;  %v4830_v19 = vld [vmem:[#allocation5 + $0x88] ss:$16 sps:$4 sm:$0xff]  }
  0x62   :  { %1516 = vmatprep.subr.bf16.mxu0 %v4813_v8  ;;  %1688 = vmatprep.subr.bf16.mxu1 %v4815_v9  ;;  %v4831_v20 = vld [vmem:[#allocation5 + $0xa4] ss:$16 sps:$4 sm:$0xff]   ;;  %v4833_v21 = vld [vmem:[#allocation5 + $0xac] ss:$16 sps:$4 sm:$0xff]   ;;  %v4835_v22 = vld [vmem:[#allocation5 + $0xa0] ss:$16 sps:$4 sm:$0xff]  }
  0x63   :  { %v4836_v23 = vld [vmem:[#allocation5 + $0xa8] ss:$16 sps:$4 sm:$0xff]   ;;  %v4837_v24 = vld [vmem:[#allocation5 + $0xc4] ss:$16 sps:$4 sm:$0xff]   ;;  %v4839_v25 = vld [vmem:[#allocation5 + $0xcc] ss:$16 sps:$4 sm:$0xff]  }
  0x64   :  { %v4841_v26 = vld [vmem:[#allocation5 + $0xc0] ss:$16 sps:$4 sm:$0xff]   ;;  %v4842_v27 = vld [vmem:[#allocation5 + $0xc8] ss:$16 sps:$4 sm:$0xff]   ;;  %v4843_v28 = vld [vmem:[#allocation5 + $0xe4] ss:$16 sps:$4 sm:$0xff]  }
  0x65   :  { %1517 = vmatpush1.bf16.msra.mxu0 %v4817_v10  ;;  %1689 = vmatpush1.bf16.msra.mxu1 %v4818_v11  ;;  %v4845_v29 = vld [vmem:[#allocation5 + $0xec] ss:$16 sps:$4 sm:$0xff]   ;;  %v4847_v30 = vld [vmem:[#allocation5 + $0xe0] ss:$16 sps:$4 sm:$0xff]   ;;  %v4848_v31 = vld [vmem:[#allocation5 + $0xe8] ss:$16 sps:$4 sm:$0xff]  }
  0x66   :  { %1518 = vmatprep.subr.bf16.mxu0 %v4819_v12  ;;  %1690 = vmatprep.subr.bf16.mxu1 %v4821_v13  ;;  %v4849_v32 = vld [vmem:[#allocation5 + $0x104] ss:$16 sps:$4 sm:$0xff]   ;;  %v4851_v33 = vld [vmem:[#allocation5 + $0x10c] ss:$16 sps:$4 sm:$0xff]   ;;  %v4853_v34 = vld [vmem:[#allocation5 + $0x100] ss:$16 sps:$4 sm:$0xff]  }
  0x67   :  { %v4854_v35 = vld [vmem:[#allocation5 + $0x108] ss:$16 sps:$4 sm:$0xff]   ;;  %v4855_v36 = vld [vmem:[#allocation5 + $0x124] ss:$16 sps:$4 sm:$0xff]   ;;  %v4857_v37 = vld [vmem:[#allocation5 + $0x12c] ss:$16 sps:$4 sm:$0xff]  }
  0x68   :  { %v4859_v38 = vld [vmem:[#allocation5 + $0x120] ss:$16 sps:$4 sm:$0xff]   ;;  %v4860_v39 = vld [vmem:[#allocation5 + $0x128] ss:$16 sps:$4 sm:$0xff]   ;;  %v4861_v40 = vld [vmem:[#allocation5 + $0x144] ss:$16 sps:$4 sm:$0xff]  }
  0x69   :  { %1519 = vmatpush1.bf16.msra.mxu0 %v4823_v14  ;;  %1691 = vmatpush1.bf16.msra.mxu1 %v4824_v15  ;;  %v4863_v41 = vld [vmem:[#allocation5 + $0x14c] ss:$16 sps:$4 sm:$0xff]   ;;  %v4865_v42 = vld [vmem:[#allocation5 + $0x140] ss:$16 sps:$4 sm:$0xff]   ;;  %v4866_v43 = vld [vmem:[#allocation5 + $0x148] ss:$16 sps:$4 sm:$0xff]  }
  0x6a   :  { %1520 = vmatprep.subr.bf16.mxu0 %v4825_v16  ;;  %1692 = vmatprep.subr.bf16.mxu1 %v4827_v17  ;;  %v4867_v44 = vld [vmem:[#allocation5 + $0x164] ss:$16 sps:$4 sm:$0xff]   ;;  %v4869_v45 = vld [vmem:[#allocation5 + $0x16c] ss:$16 sps:$4 sm:$0xff]   ;;  %v4871_v46 = vld [vmem:[#allocation5 + $0x160] ss:$16 sps:$4 sm:$0xff]  }
  0x6b   :  { %v4872_v47 = vld [vmem:[#allocation5 + $0x168] ss:$16 sps:$4 sm:$0xff]   ;;  %v4873_v49 = vld [vmem:[#allocation5 + $0x184] ss:$16 sps:$4 sm:$0xff]   ;;  %v4875_v50 = vld [vmem:[#allocation5 + $0x18c] ss:$16 sps:$4 sm:$0xff]  }
  0x6c   :  { %v4899_v48 = vld [vmem:[#allocation2 + $0x4] ss:$28 sps:$4 sm:$0xff]   ;;  %v4877_v51 = vld [vmem:[#allocation5 + $0x180] ss:$16 sps:$4 sm:$0xff]   ;;  %v4879_v53 = vld [vmem:[#allocation5 + $0x1a4] ss:$16 sps:$4 sm:$0xff]  }
  0x6d   :  { %1521 = vmatpush1.bf16.msra.mxu0 %v4829_v18  ;;  %1693 = vmatpush1.bf16.msra.mxu1 %v4830_v19  ;;  %v4878_v52 = vld [vmem:[#allocation5 + $0x188] ss:$16 sps:$4 sm:$0xff]   ;;  %v4881_v54 = vld [vmem:[#allocation5 + $0x1ac] ss:$16 sps:$4 sm:$0xff]   ;;  %v4883_v55 = vld [vmem:[#allocation5 + $0x1a0] ss:$16 sps:$4 sm:$0xff]  }
  0x6e   :  { %1522 = vmatprep.subr.bf16.mxu0 %v4831_v20  ;;  %1694 = vmatprep.subr.bf16.mxu1 %v4833_v21  ;;  %v4884_v56 = vld [vmem:[#allocation5 + $0x1a8] ss:$16 sps:$4 sm:$0xff]   ;;  %v4885_v57 = vld [vmem:[#allocation5 + $0x1c4] ss:$16 sps:$4 sm:$0xff]   ;;  %v4887_v58 = vld [vmem:[#allocation5 + $0x1cc] ss:$16 sps:$4 sm:$0xff]  }
  0x6f   :  { %1544 = vmatprep.mubr.bf16.mxu0 %v4899_v48  ;;  %1716 = vmatprep.mubr.bf16.mxu1 %v4899_v48  ;;  %v4889_v59 = vld [vmem:[#allocation5 + $0x1c0] ss:$16 sps:$4 sm:$0xff]   ;;  %v4890_v60 = vld [vmem:[#allocation5 + $0x1c8] ss:$16 sps:$4 sm:$0xff]   ;;  %v4891_v61 = vld [vmem:[#allocation5 + $0x1e4] ss:$16 sps:$4 sm:$0xff]  }
  0x70   :  { %v4893_v62 = vld [vmem:[#allocation5 + $0x1ec] ss:$16 sps:$4 sm:$0xff]   ;;  %v4895_v63 = vld [vmem:[#allocation5 + $0x1e0] ss:$16 sps:$4 sm:$0xff]   ;;  %v4896_v0 = vld [vmem:[#allocation5 + $0x1e8] ss:$16 sps:$4 sm:$0xff]  }
  0x71   :  { %1523 = vmatpush1.bf16.msra.mxu0 %v4835_v22  ;;  %1695 = vmatpush1.bf16.msra.mxu1 %v4836_v23  ;;  %v4902_v1 = vld [vmem:[#allocation5 + $0x204] ss:$16 sps:$4 sm:$0xff]   ;;  %v4905_v2 = vld [vmem:[#allocation5 + $0x20c] ss:$16 sps:$4 sm:$0xff]   ;;  %v4900_v4 = vld [vmem:[#allocation5 + $0x200] ss:$16 sps:$4 sm:$0xff]  }
  0x72   :  { %1524 = vmatprep.subr.bf16.mxu0 %v4837_v24  ;;  %1696 = vmatprep.subr.bf16.mxu1 %v4839_v25  ;;  %v4897_v3 = vld [vmem:[#allocation2] ss:$28 sps:$4 sm:$0xff]   ;;  %v4911_v7 = vld [vmem:[#allocation5 + $0x22c] ss:$16 sps:$4 sm:$0xff]   ;;  %v4906_v8 = vld [vmem:[#allocation5 + $0x220] ss:$16 sps:$4 sm:$0xff]  }
  0x73   :  { %v4903_v5 = vld [vmem:[#allocation5 + $0x208] ss:$16 sps:$4 sm:$0xff]   ;;  %v4908_v6 = vld [vmem:[#allocation5 + $0x224] ss:$16 sps:$4 sm:$0xff]   ;;  %v4917_v11 = vld [vmem:[#allocation5 + $0x24c] ss:$16 sps:$4 sm:$0xff]  }
  0x74   :  { %v4909_v9 = vld [vmem:[#allocation5 + $0x228] ss:$16 sps:$4 sm:$0xff]   ;;  %v4914_v10 = vld [vmem:[#allocation5 + $0x244] ss:$16 sps:$4 sm:$0xff]   ;;  %v4912_v12 = vld [vmem:[#allocation5 + $0x240] ss:$16 sps:$4 sm:$0xff]  }
  0x75   :  { %1525 = vmatpush1.bf16.msra.mxu0 %v4841_v26  ;;  %1697 = vmatpush1.bf16.msra.mxu1 %v4842_v27  ;;  %v4915_v13 = vld [vmem:[#allocation5 + $0x248] ss:$16 sps:$4 sm:$0xff]   ;;  %v4920_v14 = vld [vmem:[#allocation5 + $0x264] ss:$16 sps:$4 sm:$0xff]   ;;  %v4923_v15 = vld [vmem:[#allocation5 + $0x26c] ss:$16 sps:$4 sm:$0xff]  }
  0x76   :  { %1526 = vmatprep.subr.bf16.mxu0 %v4843_v28  ;;  %1698 = vmatprep.subr.bf16.mxu1 %v4845_v29  ;;  %v4918_v16 = vld [vmem:[#allocation5 + $0x260] ss:$16 sps:$4 sm:$0xff]   ;;  %v4921_v17 = vld [vmem:[#allocation5 + $0x268] ss:$16 sps:$4 sm:$0xff]   ;;  %v4926_v18 = vld [vmem:[#allocation5 + $0x284] ss:$16 sps:$4 sm:$0xff]  }
  0x77   :  { %v4929_v19 = vld [vmem:[#allocation5 + $0x28c] ss:$16 sps:$4 sm:$0xff]   ;;  %v4924_v20 = vld [vmem:[#allocation5 + $0x280] ss:$16 sps:$4 sm:$0xff]   ;;  %v4927_v21 = vld [vmem:[#allocation5 + $0x288] ss:$16 sps:$4 sm:$0xff]  }
  0x78   :  { %v4932_v22 = vld [vmem:[#allocation5 + $0x2a4] ss:$16 sps:$4 sm:$0xff]   ;;  %v4935_v23 = vld [vmem:[#allocation5 + $0x2ac] ss:$16 sps:$4 sm:$0xff]   ;;  %v4930_v24 = vld [vmem:[#allocation5 + $0x2a0] ss:$16 sps:$4 sm:$0xff]  }
  0x79   :  { %1527 = vmatpush1.bf16.msra.mxu0 %v4847_v30  ;;  %1699 = vmatpush1.bf16.msra.mxu1 %v4848_v31  ;;  %v4933_v25 = vld [vmem:[#allocation5 + $0x2a8] ss:$16 sps:$4 sm:$0xff]   ;;  %v4938_v26 = vld [vmem:[#allocation5 + $0x2c4] ss:$16 sps:$4 sm:$0xff]   ;;  %v4941_v27 = vld [vmem:[#allocation5 + $0x2cc] ss:$16 sps:$4 sm:$0xff]  }
  0x7a   :  { %1528 = vmatprep.subr.bf16.mxu0 %v4849_v32  ;;  %1700 = vmatprep.subr.bf16.mxu1 %v4851_v33  ;;  %v4936_v28 = vld [vmem:[#allocation5 + $0x2c0] ss:$16 sps:$4 sm:$0xff]   ;;  %v4939_v29 = vld [vmem:[#allocation5 + $0x2c8] ss:$16 sps:$4 sm:$0xff]   ;;  %v4944_v31 = vld [vmem:[#allocation5 + $0x2e4] ss:$16 sps:$4 sm:$0xff]  }
  0x7b   :  { %v4998_v30 = vld [vmem:[#allocation2 + $0xc] ss:$28 sps:$4 sm:$0xff]   ;;  %v4947_v32 = vld [vmem:[#allocation5 + $0x2ec] ss:$16 sps:$4 sm:$0xff]   ;;  %s5715_s1 = smov [#allocation11]  }
  0x7c   :  { %v4942_v33 = vld [vmem:[#allocation5 + $0x2e0] ss:$16 sps:$4 sm:$0xff]   ;;  %v4971_v48 = vld [vmem:[#allocation5 + $0x36c] ss:$16 sps:$4 sm:$0xff]   ;;  %s4144_s10 = sshll.u32 %s5715_s1, 4  ;;  %s4145_s10 = int_to_ptr.vmem [resolvable:$true] %s4144_s10 }
  0x7d   :  { %1529 = vmatpush1.bf16.msra.mxu0 %v4853_v34  ;;  %1701 = vmatpush1.bf16.msra.mxu1 %v4854_v35  ;;  %v4945_v34 = vld [vmem:[#allocation5 + $0x2e8] ss:$16 sps:$4 sm:$0xff]   ;;  %v4950_v35 = vld [vmem:[#allocation5 + $0x304] ss:$16 sps:$4 sm:$0xff]   ;;  %p5678_p13 = scmp.lt.s32.totalorder %s4145_s10, %s4145_s10 }
  0x7e   :  { %1530 = vmatprep.subr.bf16.mxu0 %v4855_v36  ;;  %1702 = vmatprep.subr.bf16.mxu1 %v4857_v37  ;;  %v4953_v36 = vld [vmem:[#allocation5 + $0x30c] ss:$16 sps:$4 sm:$0xff]   ;;  %v4948_v37 = vld [vmem:[#allocation5 + $0x300] ss:$16 sps:$4 sm:$0xff]  }
  0x81   :  { %1531 = vmatpush1.bf16.msra.mxu0 %v4859_v38  ;;  %1703 = vmatpush1.bf16.msra.mxu1 %v4860_v39  ;;  %v4951_v38 = vld [vmem:[#allocation5 + $0x308] ss:$16 sps:$4 sm:$0xff]   ;;  %v4956_v39 = vld [vmem:[#allocation5 + $0x324] ss:$16 sps:$4 sm:$0xff]  }
  0x82   :  { %1532 = vmatprep.subr.bf16.mxu0 %v4861_v40  ;;  %1704 = vmatprep.subr.bf16.mxu1 %v4863_v41  ;;  %v4959_v40 = vld [vmem:[#allocation5 + $0x32c] ss:$16 sps:$4 sm:$0xff]   ;;  %v4954_v41 = vld [vmem:[#allocation5 + $0x320] ss:$16 sps:$4 sm:$0xff]  }
  0x85   :  { %1533 = vmatpush1.bf16.msra.mxu0 %v4865_v42  ;;  %1705 = vmatpush1.bf16.msra.mxu1 %v4866_v43  ;;  %v4957_v42 = vld [vmem:[#allocation5 + $0x328] ss:$16 sps:$4 sm:$0xff]   ;;  %v4962_v43 = vld [vmem:[#allocation5 + $0x344] ss:$16 sps:$4 sm:$0xff]  }
  0x86   :  { %1534 = vmatprep.subr.bf16.mxu0 %v4867_v44  ;;  %1706 = vmatprep.subr.bf16.mxu1 %v4869_v45  ;;  %v4965_v44 = vld [vmem:[#allocation5 + $0x34c] ss:$16 sps:$4 sm:$0xff]   ;;  %v4960_v45 = vld [vmem:[#allocation5 + $0x340] ss:$16 sps:$4 sm:$0xff]  }
  0x89   :  { %1535 = vmatpush1.bf16.msra.mxu0 %v4871_v46  ;;  %1707 = vmatpush1.bf16.msra.mxu1 %v4872_v47  ;;  %v4963_v46 = vld [vmem:[#allocation5 + $0x348] ss:$16 sps:$4 sm:$0xff]   ;;  %v4968_v47 = vld [vmem:[#allocation5 + $0x364] ss:$16 sps:$4 sm:$0xff]  }
  0x8a   :  { %1536 = vmatprep.subr.bf16.mxu0 %v4873_v49  ;;  %1708 = vmatprep.subr.bf16.mxu1 %v4875_v50  ;;  %v4966_v49 = vld [vmem:[#allocation5 + $0x360] ss:$16 sps:$4 sm:$0xff]   ;;  %v4969_v50 = vld [vmem:[#allocation5 + $0x368] ss:$16 sps:$4 sm:$0xff]  }
  0x8d   :  { %1537 = vmatpush1.bf16.msra.mxu0 %v4877_v51  ;;  %1709 = vmatpush1.bf16.msra.mxu1 %v4878_v52  ;;  %v4974_v51 = vld [vmem:[#allocation5 + $0x384] ss:$16 sps:$4 sm:$0xff]   ;;  %v4977_v52 = vld [vmem:[#allocation5 + $0x38c] ss:$16 sps:$4 sm:$0xff]  }
  0x8e   :  { %1538 = vmatprep.subr.bf16.mxu0 %v4879_v53  ;;  %1710 = vmatprep.subr.bf16.mxu1 %v4881_v54  ;;  %v4972_v53 = vld [vmem:[#allocation5 + $0x380] ss:$16 sps:$4 sm:$0xff]   ;;  %v4975_v54 = vld [vmem:[#allocation5 + $0x388] ss:$16 sps:$4 sm:$0xff]  }
  0x91   :  { %1539 = vmatpush1.bf16.msra.mxu0 %v4883_v55  ;;  %1711 = vmatpush1.bf16.msra.mxu1 %v4884_v56  ;;  %v4980_v55 = vld [vmem:[#allocation5 + $0x3a4] ss:$16 sps:$4 sm:$0xff]   ;;  %v4983_v56 = vld [vmem:[#allocation5 + $0x3ac] ss:$16 sps:$4 sm:$0xff]  }
  0x92   :  { %1540 = vmatprep.subr.bf16.mxu0 %v4885_v57  ;;  %1712 = vmatprep.subr.bf16.mxu1 %v4887_v58  ;;  %v4978_v57 = vld [vmem:[#allocation5 + $0x3a0] ss:$16 sps:$4 sm:$0xff]   ;;  %v4981_v58 = vld [vmem:[#allocation5 + $0x3a8] ss:$16 sps:$4 sm:$0xff]  }
  0x95   :  { %1541 = vmatpush1.bf16.msra.mxu0 %v4889_v59  ;;  %1713 = vmatpush1.bf16.msra.mxu1 %v4890_v60  ;;  %v4986_v59 = vld [vmem:[#allocation5 + $0x3c4] ss:$16 sps:$4 sm:$0xff]   ;;  %v4989_v60 = vld [vmem:[#allocation5 + $0x3cc] ss:$16 sps:$4 sm:$0xff]  }
  0x96   :  { %1542 = vmatprep.subr.bf16.mxu0 %v4891_v61  ;;  %1714 = vmatprep.subr.bf16.mxu1 %v4893_v62  ;;  %v4984_v61 = vld [vmem:[#allocation5 + $0x3c0] ss:$16 sps:$4 sm:$0xff]   ;;  %v4987_v62 = vld [vmem:[#allocation5 + $0x3c8] ss:$16 sps:$4 sm:$0xff]  }
  0x99   :  { %1543 = vmatpush1.bf16.msra.mxu0 %v4895_v63  ;;  %1715 = vmatpush1.bf16.msra.mxu1 %v4896_v0  ;;  %v4992_v63 = vld [vmem:[#allocation5 + $0x3e4] ss:$16 sps:$4 sm:$0xff]   ;;  %v4995_v0 = vld [vmem:[#allocation5 + $0x3ec] ss:$16 sps:$4 sm:$0xff]  }
  0x9a   :  { %1555 = vmatprep.subr.bf16.mxu0 %v4902_v1  ;;  %1727 = vmatprep.subr.bf16.mxu1 %v4905_v2  ;;  %v4990_v1 = vld [vmem:[#allocation5 + $0x3e0] ss:$16 sps:$4 sm:$0xff]   ;;  %v4993_v2 = vld [vmem:[#allocation5 + $0x3e8] ss:$16 sps:$4 sm:$0xff]  }
  0x9c   :  { %1545 = vmatmul.mubr.bf16.vlgmr.msra.gmra.mrb[0].mxu0 %v4897_v3  ;;  %1717 = vmatmul.mubr.bf16.vlgmr.msra.gmra.mrb[0].mxu1 %v4897_v3  ;;  %v5001_v3 = vld [vmem:[#allocation5 + $0x404] ss:$16 sps:$4 sm:$0xff]  }
  0x9d   :  { %1556 = vmatpush1.bf16.msra.mxu0 %v4900_v4  ;;  %1728 = vmatpush1.bf16.msra.mxu1 %v4903_v5  ;;  %v5004_v4 = vld [vmem:[#allocation5 + $0x40c] ss:$16 sps:$4 sm:$0xff]  }
  0x9e   :  { %1557 = vmatprep.subr.bf16.mxu0 %v4908_v6  ;;  %1729 = vmatprep.subr.bf16.mxu1 %v4911_v7  ;;  %v4996_v5 = vld [vmem:[#allocation2 + $0x8] ss:$28 sps:$4 sm:$0xff]   ;;  %v5002_v7 = vld [vmem:[#allocation5 + $0x408] ss:$16 sps:$4 sm:$0xff]  }
  0x9f   :  { %1587 = vmatprep.mubr.bf16.mxu0 %v4998_v30  ;;  %1759 = vmatprep.mubr.bf16.mxu1 %v4998_v30  ;;  %v4999_v6 = vld [vmem:[#allocation5 + $0x400] ss:$16 sps:$4 sm:$0xff]   ;;  %v5040_v30 = vld [vmem:[#allocation5 + $0x4cc] ss:$16 sps:$4 sm:$0xff]  }
  0xa1   :  { %1558 = vmatpush1.bf16.msra.mxu0 %v4906_v8  ;;  %1730 = vmatpush1.bf16.msra.mxu1 %v4909_v9  ;;  %v5007_v8 = vld [vmem:[#allocation5 + $0x424] ss:$16 sps:$4 sm:$0xff]   ;;  %v5010_v9 = vld [vmem:[#allocation5 + $0x42c] ss:$16 sps:$4 sm:$0xff]  }
  0xa2   :  { %1559 = vmatprep.subr.bf16.mxu0 %v4914_v10  ;;  %1731 = vmatprep.subr.bf16.mxu1 %v4917_v11  ;;  %v5005_v10 = vld [vmem:[#allocation5 + $0x420] ss:$16 sps:$4 sm:$0xff]   ;;  %v5008_v11 = vld [vmem:[#allocation5 + $0x428] ss:$16 sps:$4 sm:$0xff]  }
  0xa5   :  { %1560 = vmatpush1.bf16.msra.mxu0 %v4912_v12  ;;  %1732 = vmatpush1.bf16.msra.mxu1 %v4915_v13  ;;  %v5097_v12 = vld [vmem:[#allocation2 + $0x14] ss:$28 sps:$4 sm:$0xff]   ;;  %v5013_v13 = vld [vmem:[#allocation5 + $0x444] ss:$16 sps:$4 sm:$0xff]  }
  0xa6   :  { %1561 = vmatprep.subr.bf16.mxu0 %v4920_v14  ;;  %1733 = vmatprep.subr.bf16.mxu1 %v4923_v15  ;;  %v5016_v14 = vld [vmem:[#allocation5 + $0x44c] ss:$16 sps:$4 sm:$0xff]   ;;  %v5011_v15 = vld [vmem:[#allocation5 + $0x440] ss:$16 sps:$4 sm:$0xff]  }
  0xa9   :  { %1562 = vmatpush1.bf16.msra.mxu0 %v4918_v16  ;;  %1734 = vmatpush1.bf16.msra.mxu1 %v4921_v17  ;;  %v5014_v16 = vld [vmem:[#allocation5 + $0x448] ss:$16 sps:$4 sm:$0xff]   ;;  %v5019_v17 = vld [vmem:[#allocation5 + $0x464] ss:$16 sps:$4 sm:$0xff]  }
  0xaa   :  { %1563 = vmatprep.subr.bf16.mxu0 %v4926_v18  ;;  %1735 = vmatprep.subr.bf16.mxu1 %v4929_v19  ;;  %v5022_v18 = vld [vmem:[#allocation5 + $0x46c] ss:$16 sps:$4 sm:$0xff]   ;;  %v5017_v19 = vld [vmem:[#allocation5 + $0x460] ss:$16 sps:$4 sm:$0xff]  }
  0xad   :  { %1564 = vmatpush1.bf16.msra.mxu0 %v4924_v20  ;;  %1736 = vmatpush1.bf16.msra.mxu1 %v4927_v21  ;;  %v5020_v20 = vld [vmem:[#allocation5 + $0x468] ss:$16 sps:$4 sm:$0xff]   ;;  %v5025_v21 = vld [vmem:[#allocation5 + $0x484] ss:$16 sps:$4 sm:$0xff]  }
  0xae   :  { %1565 = vmatprep.subr.bf16.mxu0 %v4932_v22  ;;  %1737 = vmatprep.subr.bf16.mxu1 %v4935_v23  ;;  %v5028_v22 = vld [vmem:[#allocation5 + $0x48c] ss:$16 sps:$4 sm:$0xff]   ;;  %v5023_v23 = vld [vmem:[#allocation5 + $0x480] ss:$16 sps:$4 sm:$0xff]  }
  0xb1   :  { %1566 = vmatpush1.bf16.msra.mxu0 %v4930_v24  ;;  %1738 = vmatpush1.bf16.msra.mxu1 %v4933_v25  ;;  %v5026_v24 = vld [vmem:[#allocation5 + $0x488] ss:$16 sps:$4 sm:$0xff]   ;;  %v5031_v25 = vld [vmem:[#allocation5 + $0x4a4] ss:$16 sps:$4 sm:$0xff]  }
  0xb2   :  { %1567 = vmatprep.subr.bf16.mxu0 %v4938_v26  ;;  %1739 = vmatprep.subr.bf16.mxu1 %v4941_v27  ;;  %v5034_v26 = vld [vmem:[#allocation5 + $0x4ac] ss:$16 sps:$4 sm:$0xff]   ;;  %v5029_v27 = vld [vmem:[#allocation5 + $0x4a0] ss:$16 sps:$4 sm:$0xff]  }
  0xb5   :  { %1568 = vmatpush1.bf16.msra.mxu0 %v4936_v28  ;;  %1740 = vmatpush1.bf16.msra.mxu1 %v4939_v29  ;;  %v5032_v28 = vld [vmem:[#allocation5 + $0x4a8] ss:$16 sps:$4 sm:$0xff]   ;;  %v5037_v29 = vld [vmem:[#allocation5 + $0x4c4] ss:$16 sps:$4 sm:$0xff]  }
  0xb6   :  { %1569 = vmatprep.subr.bf16.mxu0 %v4944_v31  ;;  %1741 = vmatprep.subr.bf16.mxu1 %v4947_v32  ;;  %v5035_v31 = vld [vmem:[#allocation5 + $0x4c0] ss:$16 sps:$4 sm:$0xff]   ;;  %v5038_v32 = vld [vmem:[#allocation5 + $0x4c8] ss:$16 sps:$4 sm:$0xff]  }
  0xb9   :  { %1570 = vmatpush1.bf16.msra.mxu0 %v4942_v33  ;;  %1742 = vmatpush1.bf16.msra.mxu1 %v4945_v34  ;;  %v5043_v33 = vld [vmem:[#allocation5 + $0x4e4] ss:$16 sps:$4 sm:$0xff]   ;;  %v5046_v34 = vld [vmem:[#allocation5 + $0x4ec] ss:$16 sps:$4 sm:$0xff]  }
  0xba   :  { %1571 = vmatprep.subr.bf16.mxu0 %v4950_v35  ;;  %1743 = vmatprep.subr.bf16.mxu1 %v4953_v36  ;;  %v5041_v35 = vld [vmem:[#allocation5 + $0x4e0] ss:$16 sps:$4 sm:$0xff]   ;;  %v5044_v36 = vld [vmem:[#allocation5 + $0x4e8] ss:$16 sps:$4 sm:$0xff]  }
  0xbd   :  { %1572 = vmatpush1.bf16.msra.mxu0 %v4948_v37  ;;  %1744 = vmatpush1.bf16.msra.mxu1 %v4951_v38  ;;  %v5049_v37 = vld [vmem:[#allocation5 + $0x504] ss:$16 sps:$4 sm:$0xff]   ;;  %v5052_v38 = vld [vmem:[#allocation5 + $0x50c] ss:$16 sps:$4 sm:$0xff]  }
  0xbe   :  { %1573 = vmatprep.subr.bf16.mxu0 %v4956_v39  ;;  %1745 = vmatprep.subr.bf16.mxu1 %v4959_v40  ;;  %v5047_v39 = vld [vmem:[#allocation5 + $0x500] ss:$16 sps:$4 sm:$0xff]   ;;  %v5050_v40 = vld [vmem:[#allocation5 + $0x508] ss:$16 sps:$4 sm:$0xff]  }
  0xc1   :  { %1574 = vmatpush1.bf16.msra.mxu0 %v4954_v41  ;;  %1746 = vmatpush1.bf16.msra.mxu1 %v4957_v42  ;;  %v5055_v41 = vld [vmem:[#allocation5 + $0x524] ss:$16 sps:$4 sm:$0xff]   ;;  %v5058_v42 = vld [vmem:[#allocation5 + $0x52c] ss:$16 sps:$4 sm:$0xff]  }
  0xc2   :  { %1575 = vmatprep.subr.bf16.mxu0 %v4962_v43  ;;  %1747 = vmatprep.subr.bf16.mxu1 %v4965_v44  ;;  %v5053_v43 = vld [vmem:[#allocation5 + $0x520] ss:$16 sps:$4 sm:$0xff]   ;;  %v5056_v44 = vld [vmem:[#allocation5 + $0x528] ss:$16 sps:$4 sm:$0xff]  }
  0xc5   :  { %1576 = vmatpush1.bf16.msra.mxu0 %v4960_v45  ;;  %1748 = vmatpush1.bf16.msra.mxu1 %v4963_v46  ;;  %v5061_v45 = vld [vmem:[#allocation5 + $0x544] ss:$16 sps:$4 sm:$0xff]   ;;  %v5064_v46 = vld [vmem:[#allocation5 + $0x54c] ss:$16 sps:$4 sm:$0xff]  }
  0xc6   :  { %1577 = vmatprep.subr.bf16.mxu0 %v4968_v47  ;;  %1749 = vmatprep.subr.bf16.mxu1 %v4971_v48  ;;  %v5059_v47 = vld [vmem:[#allocation5 + $0x540] ss:$16 sps:$4 sm:$0xff]   ;;  %v5062_v48 = vld [vmem:[#allocation5 + $0x548] ss:$16 sps:$4 sm:$0xff]  }
  0xc9   :  { %1578 = vmatpush1.bf16.msra.mxu0 %v4966_v49  ;;  %1750 = vmatpush1.bf16.msra.mxu1 %v4969_v50  ;;  %v5067_v49 = vld [vmem:[#allocation5 + $0x564] ss:$16 sps:$4 sm:$0xff]   ;;  %v5070_v50 = vld [vmem:[#allocation5 + $0x56c] ss:$16 sps:$4 sm:$0xff]  }
  0xca   :  { %1579 = vmatprep.subr.bf16.mxu0 %v4974_v51  ;;  %1751 = vmatprep.subr.bf16.mxu1 %v4977_v52  ;;  %v5065_v51 = vld [vmem:[#allocation5 + $0x560] ss:$16 sps:$4 sm:$0xff]   ;;  %v5068_v52 = vld [vmem:[#allocation5 + $0x568] ss:$16 sps:$4 sm:$0xff]  }
  0xcd   :  { %1580 = vmatpush1.bf16.msra.mxu0 %v4972_v53  ;;  %1752 = vmatpush1.bf16.msra.mxu1 %v4975_v54  ;;  %v5073_v53 = vld [vmem:[#allocation5 + $0x584] ss:$16 sps:$4 sm:$0xff]   ;;  %v5076_v54 = vld [vmem:[#allocation5 + $0x58c] ss:$16 sps:$4 sm:$0xff]  }
  0xce   :  { %1581 = vmatprep.subr.bf16.mxu0 %v4980_v55  ;;  %1753 = vmatprep.subr.bf16.mxu1 %v4983_v56  ;;  %v5071_v55 = vld [vmem:[#allocation5 + $0x580] ss:$16 sps:$4 sm:$0xff]   ;;  %v5074_v56 = vld [vmem:[#allocation5 + $0x588] ss:$16 sps:$4 sm:$0xff]  }
  0xd1   :  { %1582 = vmatpush1.bf16.msra.mxu0 %v4978_v57  ;;  %1754 = vmatpush1.bf16.msra.mxu1 %v4981_v58  ;;  %v5079_v57 = vld [vmem:[#allocation5 + $0x5a4] ss:$16 sps:$4 sm:$0xff]   ;;  %v5082_v58 = vld [vmem:[#allocation5 + $0x5ac] ss:$16 sps:$4 sm:$0xff]  }
  0xd2   :  { %1583 = vmatprep.subr.bf16.mxu0 %v4986_v59  ;;  %1755 = vmatprep.subr.bf16.mxu1 %v4989_v60  ;;  %v5077_v59 = vld [vmem:[#allocation5 + $0x5a0] ss:$16 sps:$4 sm:$0xff]   ;;  %v5080_v60 = vld [vmem:[#allocation5 + $0x5a8] ss:$16 sps:$4 sm:$0xff]  }
  0xd5   :  { %1584 = vmatpush1.bf16.msra.mxu0 %v4984_v61  ;;  %1756 = vmatpush1.bf16.msra.mxu1 %v4987_v62  ;;  %v5085_v61 = vld [vmem:[#allocation5 + $0x5c4] ss:$16 sps:$4 sm:$0xff]   ;;  %v5088_v62 = vld [vmem:[#allocation5 + $0x5cc] ss:$16 sps:$4 sm:$0xff]  }
  0xd6   :  { %1585 = vmatprep.subr.bf16.mxu0 %v4992_v63  ;;  %1757 = vmatprep.subr.bf16.mxu1 %v4995_v0  ;;  %v5083_v63 = vld [vmem:[#allocation5 + $0x5c0] ss:$16 sps:$4 sm:$0xff]   ;;  %v5086_v0 = vld [vmem:[#allocation5 + $0x5c8] ss:$16 sps:$4 sm:$0xff]  }
  0xd9   :  { %1586 = vmatpush1.bf16.msra.mxu0 %v4990_v1  ;;  %1758 = vmatpush1.bf16.msra.mxu1 %v4993_v2  ;;  %v5091_v1 = vld [vmem:[#allocation5 + $0x5e4] ss:$16 sps:$4 sm:$0xff]   ;;  %v5094_v2 = vld [vmem:[#allocation5 + $0x5ec] ss:$16 sps:$4 sm:$0xff]  }
  0xda   :  { %1598 = vmatprep.subr.bf16.mxu0 %v5001_v3  ;;  %1770 = vmatprep.subr.bf16.mxu1 %v5004_v4  ;;  %v5089_v3 = vld [vmem:[#allocation5 + $0x5e0] ss:$16 sps:$4 sm:$0xff]   ;;  %v5092_v4 = vld [vmem:[#allocation5 + $0x5e8] ss:$16 sps:$4 sm:$0xff]  }
  0xdc   :  { %1588 = vmatmul.mubr.bf16.vlgmr.msra.gmra.mrb[0].mxu0 %v4996_v5  ;;  %1760 = vmatmul.mubr.bf16.vlgmr.msra.gmra.mrb[0].mxu1 %v4996_v5  ;;  %v5100_v5 = vld [vmem:[#allocation5 + $0x604] ss:$16 sps:$4 sm:$0xff]  }
  0xdd   :  { %1599 = vmatpush1.bf16.msra.mxu0 %v4999_v6  ;;  %1771 = vmatpush1.bf16.msra.mxu1 %v5002_v7  ;;  %v5095_v6 = vld [vmem:[#allocation2 + $0x10] ss:$28 sps:$4 sm:$0xff]   ;;  %v5103_v7 = vld [vmem:[#allocation5 + $0x60c] ss:$16 sps:$4 sm:$0xff]  }
  0xde   :  { %1600 = vmatprep.subr.bf16.mxu0 %v5007_v8  ;;  %1772 = vmatprep.subr.bf16.mxu1 %v5010_v9  ;;  %v5098_v8 = vld [vmem:[#allocation5 + $0x600] ss:$16 sps:$4 sm:$0xff]   ;;  %v5101_v9 = vld [vmem:[#allocation5 + $0x608] ss:$16 sps:$4 sm:$0xff]  }
  0xdf   :  { %1630 = vmatprep.mubr.bf16.mxu0 %v5097_v12  ;;  %1802 = vmatprep.mubr.bf16.mxu1 %v5097_v12  ;;  %v5104_v12 = vld [vmem:[#allocation5 + $0x620] ss:$16 sps:$4 sm:$0xff]  }
  0xe1   :  { %1601 = vmatpush1.bf16.msra.mxu0 %v5005_v10  ;;  %1773 = vmatpush1.bf16.msra.mxu1 %v5008_v11  ;;  %v5106_v10 = vld [vmem:[#allocation5 + $0x624] ss:$16 sps:$4 sm:$0xff]   ;;  %v5109_v11 = vld [vmem:[#allocation5 + $0x62c] ss:$16 sps:$4 sm:$0xff]  }
  0xe2   :  { %1602 = vmatprep.subr.bf16.mxu0 %v5013_v13  ;;  %1774 = vmatprep.subr.bf16.mxu1 %v5016_v14  ;;  %v5107_v13 = vld [vmem:[#allocation5 + $0x628] ss:$16 sps:$4 sm:$0xff]   ;;  %v5112_v14 = vld [vmem:[#allocation5 + $0x644] ss:$16 sps:$4 sm:$0xff]  }
  0xe5   :  { %1603 = vmatpush1.bf16.msra.mxu0 %v5011_v15  ;;  %1775 = vmatpush1.bf16.msra.mxu1 %v5014_v16  ;;  %v5115_v15 = vld [vmem:[#allocation5 + $0x64c] ss:$16 sps:$4 sm:$0xff]   ;;  %v5110_v16 = vld [vmem:[#allocation5 + $0x640] ss:$16 sps:$4 sm:$0xff]  }
  0xe6   :  { %1604 = vmatprep.subr.bf16.mxu0 %v5019_v17  ;;  %1776 = vmatprep.subr.bf16.mxu1 %v5022_v18  ;;  %v5113_v17 = vld [vmem:[#allocation5 + $0x648] ss:$16 sps:$4 sm:$0xff]   ;;  %v5714_v18 = vmov 0  }
  0xe9   :  { %1605 = vmatpush1.bf16.msra.mxu0 %v5017_v19  ;;  %1777 = vmatpush1.bf16.msra.mxu1 %v5020_v20  ;;  %v5118_v19 = vld [vmem:[#allocation5 + $0x664] ss:$16 sps:$4 sm:$0xff]   ;;  %v5121_v20 = vld [vmem:[#allocation5 + $0x66c] ss:$16 sps:$4 sm:$0xff]  }
  0xea   :  { %1606 = vmatprep.subr.bf16.mxu0 %v5025_v21  ;;  %1778 = vmatprep.subr.bf16.mxu1 %v5028_v22  ;;  %v5116_v21 = vld [vmem:[#allocation5 + $0x660] ss:$16 sps:$4 sm:$0xff]   ;;  %v5119_v22 = vld [vmem:[#allocation5 + $0x668] ss:$16 sps:$4 sm:$0xff]  }
  0xed   :  { %1607 = vmatpush1.bf16.msra.mxu0 %v5023_v23  ;;  %1779 = vmatpush1.bf16.msra.mxu1 %v5026_v24  ;;  %v5124_v23 = vld [vmem:[#allocation5 + $0x684] ss:$16 sps:$4 sm:$0xff]   ;;  %v5127_v24 = vld [vmem:[#allocation5 + $0x68c] ss:$16 sps:$4 sm:$0xff]  }
  0xee   :  { %1608 = vmatprep.subr.bf16.mxu0 %v5031_v25  ;;  %1780 = vmatprep.subr.bf16.mxu1 %v5034_v26  ;;  %v5122_v25 = vld [vmem:[#allocation5 + $0x680] ss:$16 sps:$4 sm:$0xff]   ;;  %v5125_v26 = vld [vmem:[#allocation5 + $0x688] ss:$16 sps:$4 sm:$0xff]  }
  0xf1   :  { %1609 = vmatpush1.bf16.msra.mxu0 %v5029_v27  ;;  %1781 = vmatpush1.bf16.msra.mxu1 %v5032_v28  ;;  %v5130_v27 = vld [vmem:[#allocation5 + $0x6a4] ss:$16 sps:$4 sm:$0xff]   ;;  %v5133_v28 = vld [vmem:[#allocation5 + $0x6ac] ss:$16 sps:$4 sm:$0xff]  }
  0xf2   :  { %1610 = vmatprep.subr.bf16.mxu0 %v5037_v29  ;;  %1782 = vmatprep.subr.bf16.mxu1 %v5040_v30  ;;  %v5128_v29 = vld [vmem:[#allocation5 + $0x6a0] ss:$16 sps:$4 sm:$0xff]   ;;  %v5131_v30 = vld [vmem:[#allocation5 + $0x6a8] ss:$16 sps:$4 sm:$0xff]  }
  0xf5   :  { %1611 = vmatpush1.bf16.msra.mxu0 %v5035_v31  ;;  %1783 = vmatpush1.bf16.msra.mxu1 %v5038_v32  ;;  %v5136_v31 = vld [vmem:[#allocation5 + $0x6c4] ss:$16 sps:$4 sm:$0xff]   ;;  %v5139_v32 = vld [vmem:[#allocation5 + $0x6cc] ss:$16 sps:$4 sm:$0xff]  }
  0xf6   :  { %1612 = vmatprep.subr.bf16.mxu0 %v5043_v33  ;;  %1784 = vmatprep.subr.bf16.mxu1 %v5046_v34  ;;  %v5134_v33 = vld [vmem:[#allocation5 + $0x6c0] ss:$16 sps:$4 sm:$0xff]   ;;  %v5137_v34 = vld [vmem:[#allocation5 + $0x6c8] ss:$16 sps:$4 sm:$0xff]  }
  0xf9   :  { %1613 = vmatpush1.bf16.msra.mxu0 %v5041_v35  ;;  %1785 = vmatpush1.bf16.msra.mxu1 %v5044_v36  ;;  %v5142_v35 = vld [vmem:[#allocation5 + $0x6e4] ss:$16 sps:$4 sm:$0xff]   ;;  %v5145_v36 = vld [vmem:[#allocation5 + $0x6ec] ss:$16 sps:$4 sm:$0xff]  }
  0xfa   :  { %1614 = vmatprep.subr.bf16.mxu0 %v5049_v37  ;;  %1786 = vmatprep.subr.bf16.mxu1 %v5052_v38  ;;  %v5140_v37 = vld [vmem:[#allocation5 + $0x6e0] ss:$16 sps:$4 sm:$0xff]   ;;  %v5143_v38 = vld [vmem:[#allocation5 + $0x6e8] ss:$16 sps:$4 sm:$0xff]  }
  0xfd   :  { %1615 = vmatpush1.bf16.msra.mxu0 %v5047_v39  ;;  %1787 = vmatpush1.bf16.msra.mxu1 %v5050_v40  ;;  %v5149_v39 = vld [vmem:[#allocation7 + $0x4] ss:$16 sps:$4 sm:$0xff]   ;;  %v5152_v40 = vld [vmem:[#allocation7 + $0xc] ss:$16 sps:$4 sm:$0xff]  }
  0xfe   :  { %1616 = vmatprep.subr.bf16.mxu0 %v5055_v41  ;;  %1788 = vmatprep.subr.bf16.mxu1 %v5058_v42  ;;  %v5146_v41 = vld [vmem:[#allocation2 + $0x18] ss:$28 sps:$4 sm:$0xff]  }
  0xff   :  { %v5147_v42 = vld [vmem:[#allocation7] ss:$16 sps:$4 sm:$0xff]  }
 0x101   :  { %1617 = vmatpush1.bf16.msra.mxu0 %v5053_v43  ;;  %1789 = vmatpush1.bf16.msra.mxu1 %v5056_v44  ;;  %v5150_v43 = vld [vmem:[#allocation7 + $0x8] ss:$16 sps:$4 sm:$0xff]   ;;  %v5155_v44 = vld [vmem:[#allocation7 + $0x24] ss:$16 sps:$4 sm:$0xff]  }
 0x102   :  { %1618 = vmatprep.subr.bf16.mxu0 %v5061_v45  ;;  %1790 = vmatprep.subr.bf16.mxu1 %v5064_v46  ;;  %v5158_v45 = vld [vmem:[#allocation7 + $0x2c] ss:$16 sps:$4 sm:$0xff]   ;;  %v5153_v46 = vld [vmem:[#allocation7 + $0x20] ss:$16 sps:$4 sm:$0xff]  }
 0x105   :  { %1619 = vmatpush1.bf16.msra.mxu0 %v5059_v47  ;;  %1791 = vmatpush1.bf16.msra.mxu1 %v5062_v48  ;;  %v5156_v47 = vld [vmem:[#allocation7 + $0x28] ss:$16 sps:$4 sm:$0xff]   ;;  %v5161_v48 = vld [vmem:[#allocation7 + $0x44] ss:$16 sps:$4 sm:$0xff]  }
 0x106   :  { %1620 = vmatprep.subr.bf16.mxu0 %v5067_v49  ;;  %1792 = vmatprep.subr.bf16.mxu1 %v5070_v50  ;;  %v5164_v49 = vld [vmem:[#allocation7 + $0x4c] ss:$16 sps:$4 sm:$0xff]   ;;  %v5159_v50 = vld [vmem:[#allocation7 + $0x40] ss:$16 sps:$4 sm:$0xff]  }
 0x109   :  { %1621 = vmatpush1.bf16.msra.mxu0 %v5065_v51  ;;  %1793 = vmatpush1.bf16.msra.mxu1 %v5068_v52  ;;  %v5162_v51 = vld [vmem:[#allocation7 + $0x48] ss:$16 sps:$4 sm:$0xff]   ;;  %v5167_v52 = vld [vmem:[#allocation7 + $0x64] ss:$16 sps:$4 sm:$0xff]  }
 0x10a   :  { %1622 = vmatprep.subr.bf16.mxu0 %v5073_v53  ;;  %1794 = vmatprep.subr.bf16.mxu1 %v5076_v54  ;;  %v5170_v53 = vld [vmem:[#allocation7 + $0x6c] ss:$16 sps:$4 sm:$0xff]   ;;  %v5165_v54 = vld [vmem:[#allocation7 + $0x60] ss:$16 sps:$4 sm:$0xff]  }
 0x10d   :  { %1623 = vmatpush1.bf16.msra.mxu0 %v5071_v55  ;;  %1795 = vmatpush1.bf16.msra.mxu1 %v5074_v56  ;;  %v5168_v55 = vld [vmem:[#allocation7 + $0x68] ss:$16 sps:$4 sm:$0xff]   ;;  %v5173_v56 = vld [vmem:[#allocation7 + $0x84] ss:$16 sps:$4 sm:$0xff]  }
 0x10e   :  { %1624 = vmatprep.subr.bf16.mxu0 %v5079_v57  ;;  %1796 = vmatprep.subr.bf16.mxu1 %v5082_v58  ;;  %v5176_v57 = vld [vmem:[#allocation7 + $0x8c] ss:$16 sps:$4 sm:$0xff]   ;;  %v5171_v58 = vld [vmem:[#allocation7 + $0x80] ss:$16 sps:$4 sm:$0xff]  }
 0x111   :  { %1625 = vmatpush1.bf16.msra.mxu0 %v5077_v59  ;;  %1797 = vmatpush1.bf16.msra.mxu1 %v5080_v60  ;;  %v5174_v59 = vld [vmem:[#allocation7 + $0x88] ss:$16 sps:$4 sm:$0xff]   ;;  %v5179_v60 = vld [vmem:[#allocation7 + $0xa4] ss:$16 sps:$4 sm:$0xff]  }
 0x112   :  { %1626 = vmatprep.subr.bf16.mxu0 %v5085_v61  ;;  %1798 = vmatprep.subr.bf16.mxu1 %v5088_v62  ;;  %v5182_v61 = vld [vmem:[#allocation7 + $0xac] ss:$16 sps:$4 sm:$0xff]   ;;  %v5177_v62 = vld [vmem:[#allocation7 + $0xa0] ss:$16 sps:$4 sm:$0xff]  }
 0x115   :  { %1627 = vmatpush1.bf16.msra.mxu0 %v5083_v63  ;;  %1799 = vmatpush1.bf16.msra.mxu1 %v5086_v0  ;;  %v5180_v63 = vld [vmem:[#allocation7 + $0xa8] ss:$16 sps:$4 sm:$0xff]   ;;  %v5185_v0 = vld [vmem:[#allocation7 + $0xc4] ss:$16 sps:$4 sm:$0xff]  }
 0x116   :  { %1628 = vmatprep.subr.bf16.mxu0 %v5091_v1  ;;  %1800 = vmatprep.subr.bf16.mxu1 %v5094_v2  ;;  %v5188_v1 = vld [vmem:[#allocation7 + $0xcc] ss:$16 sps:$4 sm:$0xff]   ;;  %v5183_v2 = vld [vmem:[#allocation7 + $0xc0] ss:$16 sps:$4 sm:$0xff]  }
 0x119   :  { %1629 = vmatpush1.bf16.msra.mxu0 %v5089_v3  ;;  %1801 = vmatpush1.bf16.msra.mxu1 %v5092_v4  ;;  %v5186_v3 = vld [vmem:[#allocation7 + $0xc8] ss:$16 sps:$4 sm:$0xff]   ;;  %v5191_v4 = vld [vmem:[#allocation7 + $0xe4] ss:$16 sps:$4 sm:$0xff]  }
 0x11a   :  { %1641 = vmatprep.subr.bf16.mxu0 %v5100_v5  ;;  %1813 = vmatprep.subr.bf16.mxu1 %v5103_v7  ;;  %v5194_v5 = vld [vmem:[#allocation7 + $0xec] ss:$16 sps:$4 sm:$0xff]   ;;  %v5192_v7 = vld [vmem:[#allocation7 + $0xe8] ss:$16 sps:$4 sm:$0xff]  }
 0x11c   :  { %1631 = vmatmul.mubr.bf16.vlgmr.msra.gmra.mrb[0].mxu0 %v5095_v6  ;;  %1803 = vmatmul.mubr.bf16.vlgmr.msra.gmra.mrb[0].mxu1 %v5095_v6  ;;  %v5189_v6 = vld [vmem:[#allocation7 + $0xe0] ss:$16 sps:$4 sm:$0xff]  }
 0x11d   :  { %1642 = vmatpush1.bf16.msra.mxu0 %v5098_v8  ;;  %1814 = vmatpush1.bf16.msra.mxu1 %v5101_v9  ;;  %v5197_v8 = vld [vmem:[#allocation7 + $0x104] ss:$16 sps:$4 sm:$0xff]   ;;  %v5200_v9 = vld [vmem:[#allocation7 + $0x10c] ss:$16 sps:$4 sm:$0xff]  }
 0x11e   :  { %1643 = vmatprep.subr.bf16.mxu0 %v5106_v10  ;;  %1815 = vmatprep.subr.bf16.mxu1 %v5109_v11  ;;  %v5195_v10 = vld [vmem:[#allocation7 + $0x100] ss:$16 sps:$4 sm:$0xff]   ;;  %v5198_v11 = vld [vmem:[#allocation7 + $0x108] ss:$16 sps:$4 sm:$0xff]  }
 0x11f   :  { %1673 = vmatprep.mubr.bf16.mxu0 %v5714_v18  ;;  %1845 = vmatprep.mubr.bf16.mxu1 %v5714_v18  ;;  %v5207_v18 = vld [vmem:[#allocation7 + $0x140] ss:$16 sps:$4 sm:$0xff]  }
 0x121   :  { %1644 = vmatpush1.bf16.msra.mxu0 %v5104_v12  ;;  %1816 = vmatpush1.bf16.msra.mxu1 %v5107_v13  ;;  %v5203_v12 = vld [vmem:[#allocation7 + $0x124] ss:$16 sps:$4 sm:$0xff]   ;;  %v5206_v13 = vld [vmem:[#allocation7 + $0x12c] ss:$16 sps:$4 sm:$0xff]  }
 0x122   :  { %1645 = vmatprep.subr.bf16.mxu0 %v5112_v14  ;;  %1817 = vmatprep.subr.bf16.mxu1 %v5115_v15  ;;  %v5201_v14 = vld [vmem:[#allocation7 + $0x120] ss:$16 sps:$4 sm:$0xff]   ;;  %v5204_v15 = vld [vmem:[#allocation7 + $0x128] ss:$16 sps:$4 sm:$0xff]  }
 0x125   :  { %1646 = vmatpush1.bf16.msra.mxu0 %v5110_v16  ;;  %1818 = vmatpush1.bf16.msra.mxu1 %v5113_v17  ;;  %v5209_v16 = vld [vmem:[#allocation7 + $0x144] ss:$16 sps:$4 sm:$0xff]   ;;  %v5212_v17 = vld [vmem:[#allocation7 + $0x14c] ss:$16 sps:$4 sm:$0xff]  }
 0x126   :  { %1647 = vmatprep.subr.bf16.mxu0 %v5118_v19  ;;  %1819 = vmatprep.subr.bf16.mxu1 %v5121_v20  ;;  %v5210_v19 = vld [vmem:[#allocation7 + $0x148] ss:$16 sps:$4 sm:$0xff]   ;;  %v5215_v20 = vld [vmem:[#allocation7 + $0x164] ss:$16 sps:$4 sm:$0xff]  }
 0x129   :  { %1648 = vmatpush1.bf16.msra.mxu0 %v5116_v21  ;;  %1820 = vmatpush1.bf16.msra.mxu1 %v5119_v22  ;;  %v5218_v21 = vld [vmem:[#allocation7 + $0x16c] ss:$16 sps:$4 sm:$0xff]   ;;  %v5213_v22 = vld [vmem:[#allocation7 + $0x160] ss:$16 sps:$4 sm:$0xff]  }
 0x12a   :  { %1649 = vmatprep.subr.bf16.mxu0 %v5124_v23  ;;  %1821 = vmatprep.subr.bf16.mxu1 %v5127_v24  ;;  %v5216_v23 = vld [vmem:[#allocation7 + $0x168] ss:$16 sps:$4 sm:$0xff]   ;;  %v5221_v24 = vld [vmem:[#allocation7 + $0x184] ss:$16 sps:$4 sm:$0xff]  }
 0x12d   :  { %1650 = vmatpush1.bf16.msra.mxu0 %v5122_v25  ;;  %1822 = vmatpush1.bf16.msra.mxu1 %v5125_v26  ;;  %v5224_v25 = vld [vmem:[#allocation7 + $0x18c] ss:$16 sps:$4 sm:$0xff]   ;;  %v5219_v26 = vld [vmem:[#allocation7 + $0x180] ss:$16 sps:$4 sm:$0xff]  }
 0x12e   :  { %1651 = vmatprep.subr.bf16.mxu0 %v5130_v27  ;;  %1823 = vmatprep.subr.bf16.mxu1 %v5133_v28  ;;  %v5222_v27 = vld [vmem:[#allocation7 + $0x188] ss:$16 sps:$4 sm:$0xff]   ;;  %v5227_v28 = vld [vmem:[#allocation7 + $0x1a4] ss:$16 sps:$4 sm:$0xff]  }
 0x131   :  { %1652 = vmatpush1.bf16.msra.mxu0 %v5128_v29  ;;  %1824 = vmatpush1.bf16.msra.mxu1 %v5131_v30  ;;  %v5230_v29 = vld [vmem:[#allocation7 + $0x1ac] ss:$16 sps:$4 sm:$0xff]   ;;  %v5225_v30 = vld [vmem:[#allocation7 + $0x1a0] ss:$16 sps:$4 sm:$0xff]  }
 0x132   :  { %1653 = vmatprep.subr.bf16.mxu0 %v5136_v31  ;;  %1825 = vmatprep.subr.bf16.mxu1 %v5139_v32  ;;  %v5228_v31 = vld [vmem:[#allocation7 + $0x1a8] ss:$16 sps:$4 sm:$0xff]   ;;  %v5233_v32 = vld [vmem:[#allocation7 + $0x1c4] ss:$16 sps:$4 sm:$0xff]  }
 0x135   :  { %1654 = vmatpush1.bf16.msra.mxu0 %v5134_v33  ;;  %1826 = vmatpush1.bf16.msra.mxu1 %v5137_v34  ;;  %v5236_v33 = vld [vmem:[#allocation7 + $0x1cc] ss:$16 sps:$4 sm:$0xff]   ;;  %v5231_v34 = vld [vmem:[#allocation7 + $0x1c0] ss:$16 sps:$4 sm:$0xff]  }
 0x136   :  { %1655 = vmatprep.subr.bf16.mxu0 %v5142_v35  ;;  %1827 = vmatprep.subr.bf16.mxu1 %v5145_v36  ;;  %v5234_v35 = vld [vmem:[#allocation7 + $0x1c8] ss:$16 sps:$4 sm:$0xff]   ;;  %v5239_v36 = vld [vmem:[#allocation7 + $0x1e4] ss:$16 sps:$4 sm:$0xff]  }
 0x139   :  { %1656 = vmatpush1.bf16.msra.mxu0 %v5140_v37  ;;  %1828 = vmatpush1.bf16.msra.mxu1 %v5143_v38  ;;  %v5242_v37 = vld [vmem:[#allocation7 + $0x1ec] ss:$16 sps:$4 sm:$0xff]   ;;  %v5237_v38 = vld [vmem:[#allocation7 + $0x1e0] ss:$16 sps:$4 sm:$0xff]  }
 0x13a   :  { %2650 = vmatprep.subr.bf16.mxu0 %v5149_v39  ;;  %2736 = vmatprep.subr.bf16.mxu1 %v5152_v40  ;;  %v5240_v39 = vld [vmem:[#allocation7 + $0x1e8] ss:$16 sps:$4 sm:$0xff]   ;;  %v5245_v40 = vld [vmem:[#allocation7 + $0x204] ss:$16 sps:$4 sm:$0xff]  }
 0x13c   :  { %1674 = vmatmul.mubr.bf16.vlgmr.msra.gmra.mrb[0].mxu0 %v5146_v41  ;;  %1846 = vmatmul.mubr.bf16.vlgmr.msra.gmra.mrb[0].mxu1 %v5146_v41  ;;  %v5248_v41 = vld [vmem:[#allocation7 + $0x20c] ss:$16 sps:$4 sm:$0xff]  }
 0x13d   :  { %2651 = vmatpush1.bf16.msra.mxu0 %v5147_v42  ;;  %2737 = vmatpush1.bf16.msra.mxu1 %v5150_v43  ;;  %v336_v42 = vlaneseq }
 0x13e   :  { %2652 = vmatprep.subr.bf16.mxu0 %v5155_v44  ;;  %2738 = vmatprep.subr.bf16.mxu1 %v5158_v45 }
 0x13f   :  { %v337_v43 = vshrl.u32 %v336_v42, 7  ;;  %v5294_v42 = vld [vmem:[#allocation7 + $0x308] ss:$16 sps:$4 sm:$0xff]  }
 0x141   :  { %2653 = vmatpush1.bf16.msra.mxu0 %v5153_v46  ;;  %2739 = vmatpush1.bf16.msra.mxu1 %v5156_v47  ;;  %v5837_v44 = vsub.s32 0, %v337_v43  ;;  %v5839_v45 = vsub.s32 2, %v337_v43  ;;  %v334_v46 = vld [vmem:[%s5891_s2] sm:$0xf]  ;;  %v5844_v47 = vsub.s32 1, %v337_v43 }
 0x142   :  { %2654 = vmatprep.subr.bf16.mxu0 %v5161_v48  ;;  %2740 = vmatprep.subr.bf16.mxu1 %v5164_v49  ;;  %v5846_v48 = vsub.s32 3, %v337_v43  ;;  %v5299_v43 = vld [vmem:[#allocation7 + $0x324] ss:$16 sps:$4 sm:$0xff]  }
 0x143   :  { %v339_v49 = vrot.slane %v334_v46, %v5837_v44 }
 0x145   :  { %2655 = vmatpush1.bf16.msra.mxu0 %v5159_v50  ;;  %2741 = vmatpush1.bf16.msra.mxu1 %v5162_v51  ;;  %v347_v50 = vrot.slane %v334_v46, %v5839_v45 }
 0x146   :  { %2656 = vmatprep.subr.bf16.mxu0 %v5167_v52  ;;  %2742 = vmatprep.subr.bf16.mxu1 %v5170_v53  ;;  %v343_v53 = vrot.slane %v334_v46, %v5844_v47 }
 0x149   :  { %2657 = vmatpush1.bf16.msra.mxu0 %v5165_v54  ;;  %2743 = vmatpush1.bf16.msra.mxu1 %v5168_v55  ;;  %v351_v54 = vrot.slane %v334_v46, %v5846_v48  ;;  %v5302_v46 = vld [vmem:[#allocation7 + $0x32c] ss:$16 sps:$4 sm:$0xff]  }
 0x14a   :  { %2658 = vmatprep.subr.bf16.mxu0 %v5173_v56  ;;  %2744 = vmatprep.subr.bf16.mxu1 %v5176_v57 }
 0x14d   :  { %2659 = vmatpush1.bf16.msra.mxu0 %v5171_v58  ;;  %2745 = vmatpush1.bf16.msra.mxu1 %v5174_v59 }
 0x14e   :  { %2660 = vmatprep.subr.bf16.mxu0 %v5179_v60  ;;  %2746 = vmatprep.subr.bf16.mxu1 %v5182_v61 }
 0x151   :  { %2661 = vmatpush1.bf16.msra.mxu0 %v5177_v62  ;;  %2747 = vmatpush1.bf16.msra.mxu1 %v5180_v63 }
 0x152   :  { %2662 = vmatprep.subr.bf16.mxu0 %v5185_v0  ;;  %2748 = vmatprep.subr.bf16.mxu1 %v5188_v1 }
 0x155   :  { %2663 = vmatpush1.bf16.msra.mxu0 %v5183_v2  ;;  %2749 = vmatpush1.bf16.msra.mxu1 %v5186_v3 }
 0x156   :  { %2664 = vmatprep.subr.bf16.mxu0 %v5191_v4  ;;  %2750 = vmatprep.subr.bf16.mxu1 %v5194_v5 }
 0x159   :  { %2665 = vmatpush1.bf16.msra.mxu0 %v5189_v6  ;;  %2751 = vmatpush1.bf16.msra.mxu1 %v5192_v7 }
 0x15a   :  { %2666 = vmatprep.subr.bf16.mxu0 %v5197_v8  ;;  %2752 = vmatprep.subr.bf16.mxu1 %v5200_v9  ;;  %v5243_v9 = vld [vmem:[#allocation7 + $0x200] ss:$16 sps:$4 sm:$0xff]  }
 0x15d   :  { %2667 = vmatpush1.bf16.msra.mxu0 %v5195_v10  ;;  %2753 = vmatpush1.bf16.msra.mxu1 %v5198_v11  ;;  %v5246_v10 = vld [vmem:[#allocation7 + $0x208] ss:$16 sps:$4 sm:$0xff]   ;;  %v5251_v11 = vld [vmem:[#allocation7 + $0x224] ss:$16 sps:$4 sm:$0xff]  }
 0x15e   :  { %2668 = vmatprep.subr.bf16.mxu0 %v5203_v12  ;;  %2754 = vmatprep.subr.bf16.mxu1 %v5206_v13  ;;  %v5254_v12 = vld [vmem:[#allocation7 + $0x22c] ss:$16 sps:$4 sm:$0xff]   ;;  %v5249_v13 = vld [vmem:[#allocation7 + $0x220] ss:$16 sps:$4 sm:$0xff]  }
 0x161   :  { %2669 = vmatpush1.bf16.msra.mxu0 %v5201_v14  ;;  %2755 = vmatpush1.bf16.msra.mxu1 %v5204_v15  ;;  %v5252_v14 = vld [vmem:[#allocation7 + $0x228] ss:$16 sps:$4 sm:$0xff]   ;;  %v5257_v15 = vld [vmem:[#allocation7 + $0x244] ss:$16 sps:$4 sm:$0xff]  }
 0x162   :  { %2670 = vmatprep.subr.bf16.mxu0 %v5209_v16  ;;  %2756 = vmatprep.subr.bf16.mxu1 %v5212_v17  ;;  %v5260_v16 = vld [vmem:[#allocation7 + $0x24c] ss:$16 sps:$4 sm:$0xff]   ;;  %v5255_v17 = vld [vmem:[#allocation7 + $0x240] ss:$16 sps:$4 sm:$0xff]  }
 0x165   :  { %2671 = vmatpush1.bf16.msra.mxu0 %v5207_v18  ;;  %2757 = vmatpush1.bf16.msra.mxu1 %v5210_v19  ;;  %v5258_v18 = vld [vmem:[#allocation7 + $0x248] ss:$16 sps:$4 sm:$0xff]   ;;  %v5263_v19 = vld [vmem:[#allocation7 + $0x264] ss:$16 sps:$4 sm:$0xff]  }
 0x166   :  { %2672 = vmatprep.subr.bf16.mxu0 %v5215_v20  ;;  %2758 = vmatprep.subr.bf16.mxu1 %v5218_v21  ;;  %v5266_v20 = vld [vmem:[#allocation7 + $0x26c] ss:$16 sps:$4 sm:$0xff]   ;;  %v5261_v21 = vld [vmem:[#allocation7 + $0x260] ss:$16 sps:$4 sm:$0xff]  }
 0x169   :  { %2673 = vmatpush1.bf16.msra.mxu0 %v5213_v22  ;;  %2759 = vmatpush1.bf16.msra.mxu1 %v5216_v23  ;;  %v5264_v22 = vld [vmem:[#allocation7 + $0x268] ss:$16 sps:$4 sm:$0xff]   ;;  %v5269_v23 = vld [vmem:[#allocation7 + $0x284] ss:$16 sps:$4 sm:$0xff]  }
 0x16a   :  { %2674 = vmatprep.subr.bf16.mxu0 %v5221_v24  ;;  %2760 = vmatprep.subr.bf16.mxu1 %v5224_v25  ;;  %v5272_v24 = vld [vmem:[#allocation7 + $0x28c] ss:$16 sps:$4 sm:$0xff]   ;;  %v5267_v25 = vld [vmem:[#allocation7 + $0x280] ss:$16 sps:$4 sm:$0xff]  }
 0x16d   :  { %2675 = vmatpush1.bf16.msra.mxu0 %v5219_v26  ;;  %2761 = vmatpush1.bf16.msra.mxu1 %v5222_v27  ;;  %v5270_v26 = vld [vmem:[#allocation7 + $0x288] ss:$16 sps:$4 sm:$0xff]   ;;  %v5275_v27 = vld [vmem:[#allocation7 + $0x2a4] ss:$16 sps:$4 sm:$0xff]  }
 0x16e   :  { %2676 = vmatprep.subr.bf16.mxu0 %v5227_v28  ;;  %2762 = vmatprep.subr.bf16.mxu1 %v5230_v29  ;;  %v5278_v28 = vld [vmem:[#allocation7 + $0x2ac] ss:$16 sps:$4 sm:$0xff]   ;;  %v5273_v29 = vld [vmem:[#allocation7 + $0x2a0] ss:$16 sps:$4 sm:$0xff]  }
 0x171   :  { %2677 = vmatpush1.bf16.msra.mxu0 %v5225_v30  ;;  %2763 = vmatpush1.bf16.msra.mxu1 %v5228_v31  ;;  %v5276_v30 = vld [vmem:[#allocation7 + $0x2a8] ss:$16 sps:$4 sm:$0xff]   ;;  %v5281_v31 = vld [vmem:[#allocation7 + $0x2c4] ss:$16 sps:$4 sm:$0xff]  }
 0x172   :  { %2678 = vmatprep.subr.bf16.mxu0 %v5233_v32  ;;  %2764 = vmatprep.subr.bf16.mxu1 %v5236_v33  ;;  %v5284_v32 = vld [vmem:[#allocation7 + $0x2cc] ss:$16 sps:$4 sm:$0xff]   ;;  %v5279_v33 = vld [vmem:[#allocation7 + $0x2c0] ss:$16 sps:$4 sm:$0xff]  }
 0x175   :  { %2679 = vmatpush1.bf16.msra.mxu0 %v5231_v34  ;;  %2765 = vmatpush1.bf16.msra.mxu1 %v5234_v35  ;;  %v5282_v34 = vld [vmem:[#allocation7 + $0x2c8] ss:$16 sps:$4 sm:$0xff]   ;;  %v5287_v35 = vld [vmem:[#allocation7 + $0x2e4] ss:$16 sps:$4 sm:$0xff]  }
 0x176   :  { %2680 = vmatprep.subr.bf16.mxu0 %v5239_v36  ;;  %2766 = vmatprep.subr.bf16.mxu1 %v5242_v37  ;;  %v5290_v36 = vld [vmem:[#allocation7 + $0x2ec] ss:$16 sps:$4 sm:$0xff]   ;;  %v5285_v37 = vld [vmem:[#allocation7 + $0x2e0] ss:$16 sps:$4 sm:$0xff]  }
 0x179   :  { %2681 = vmatpush1.bf16.msra.mxu0 %v5237_v38  ;;  %2767 = vmatpush1.bf16.msra.mxu1 %v5240_v39  ;;  %v5288_v38 = vld [vmem:[#allocation7 + $0x2e8] ss:$16 sps:$4 sm:$0xff]   ;;  %v5293_v39 = vld [vmem:[#allocation7 + $0x304] ss:$16 sps:$4 sm:$0xff]  }
 0x17a   :  { %2693 = vmatprep.subr.bf16.mxu0 %v5245_v40  ;;  %2779 = vmatprep.subr.bf16.mxu1 %v5248_v41  ;;  %v5296_v40 = vld [vmem:[#allocation7 + $0x30c] ss:$16 sps:$4 sm:$0xff]   ;;  %v5291_v41 = vld [vmem:[#allocation7 + $0x300] ss:$16 sps:$4 sm:$0xff]  }
 0x20f   :  { %v1675_v51 = vpop.f32.mrb[0].mxu0  ;;  %v1847_v52 = vpop.f32.mrb[0].mxu1 }
 0x210   :  { %v1677_v55 = vpop.f32.mrb[1].mxu0  ;;  %v1849_v56 = vpop.f32.mrb[1].mxu1  ;;  %v4722_v59 = vadd.f32 %v1675_v51, %v339_v49  ;;  %v4726_v60 = vadd.f32 %v1847_v52, %v347_v50  ;;  %v5305_v51 = vld [vmem:[#allocation7 + $0x344] ss:$16 sps:$4 sm:$0xff]   ;;  %v5308_v52 = vld [vmem:[#allocation7 + $0x34c] ss:$16 sps:$4 sm:$0xff]  }
 0x211   :  { %v1679_v57 = vpop.f32.mrb[2].mxu0  ;;  %v1851_v58 = vpop.f32.mrb[2].mxu1  ;;  %v4723_v1 = vadd.f32 %v1677_v55, %v343_v53  ;;  %v4727_v2 = vadd.f32 %v1849_v56, %v351_v54  ;;  %v5311_v55 = vld [vmem:[#allocation7 + $0x364] ss:$16 sps:$4 sm:$0xff]   ;;  %v5314_v56 = vld [vmem:[#allocation7 + $0x36c] ss:$16 sps:$4 sm:$0xff]  }
 0x212   :  { %v4724_v61 = vadd.f32 %v1679_v57, %v339_v49  ;;  %v4728_v62 = vadd.f32 %v1851_v58, %v347_v50  ;;  %v1681_v63 = vpop.f32.mrb[3].mxu0  ;;  %v1853_v0 = vpop.f32.mrb[3].mxu1  ;;  %v5297_v49 = vld [vmem:[#allocation7 + $0x320] ss:$16 sps:$4 sm:$0xff]   ;;  %v5300_v50 = vld [vmem:[#allocation7 + $0x328] ss:$16 sps:$4 sm:$0xff]  }
 0x213   :  { %v4725_v3 = vadd.f32 %v1681_v63, %v343_v53  ;;  %v4729_v4 = vadd.f32 %v1853_v0, %v351_v54  ;;  %v5303_v53 = vld [vmem:[#allocation7 + $0x340] ss:$16 sps:$4 sm:$0xff]   ;;  %v5306_v54 = vld [vmem:[#allocation7 + $0x348] ss:$16 sps:$4 sm:$0xff]   ;;  %v5323_v63 = vld [vmem:[#allocation7 + $0x3a4] ss:$16 sps:$4 sm:$0xff]  }
 0x214   :  { %v1856_v5 = vpack.c.bf16 %v4724_v61, %v4722_v59  ;;  %v5852_v6 = vpack.c.bf16 %v4728_v62, %v4726_v60  ;;  %v5309_v57 = vld [vmem:[#allocation7 + $0x360] ss:$16 sps:$4 sm:$0xff]   ;;  %v5312_v58 = vld [vmem:[#allocation7 + $0x368] ss:$16 sps:$4 sm:$0xff]   ;;  %v5317_v59 = vld [vmem:[#allocation7 + $0x384] ss:$16 sps:$4 sm:$0xff]  }
 0x215   :  { %v1857_v7 = vpack.c.bf16 %v4725_v3, %v4723_v1  ;;  %v1859_v8 = vpack.c.bf16 %v4729_v4, %v4727_v2  ;;  %v5320_v60 = vld [vmem:[#allocation7 + $0x38c] ss:$16 sps:$4 sm:$0xff]   ;;  %v5315_v61 = vld [vmem:[#allocation7 + $0x380] ss:$16 sps:$4 sm:$0xff]   ;;  %v5318_v62 = vld [vmem:[#allocation7 + $0x388] ss:$16 sps:$4 sm:$0xff]  }
 0x216   :  { %v5326_v0 = vld [vmem:[#allocation7 + $0x3ac] ss:$16 sps:$4 sm:$0xff]   ;;  %v5321_v1 = vld [vmem:[#allocation7 + $0x3a0] ss:$16 sps:$4 sm:$0xff]   ;;  %v5324_v2 = vld [vmem:[#allocation7 + $0x3a8] ss:$16 sps:$4 sm:$0xff]  }
 0x217   :  { %2682 = vmatprep.mubr.bf16.mxu0 %v1857_v7  ;;  %2768 = vmatprep.mubr.bf16.mxu1 %v1857_v7  ;;  %v5329_v3 = vld [vmem:[#allocation7 + $0x3c4] ss:$16 sps:$4 sm:$0xff]   ;;  %v5332_v4 = vld [vmem:[#allocation7 + $0x3cc] ss:$16 sps:$4 sm:$0xff]   ;;  %v5330_v7 = vld [vmem:[#allocation7 + $0x3c8] ss:$16 sps:$4 sm:$0xff]  }
 0x218   :  { %2683 = vmatmul.mubr.bf16.vlgmr.msra.gmra.mrb[4].mxu0 %v1856_v5  ;;  %2769 = vmatmul.mubr.bf16.vlgmr.msra.gmra.mrb[4].mxu1 %v1856_v5  ;;  %v5327_v5 = vld [vmem:[#allocation7 + $0x3c0] ss:$16 sps:$4 sm:$0xff]  }
 0x219   :  { %2694 = vmatpush1.bf16.msra.mxu0 %v5243_v9  ;;  %2780 = vmatpush1.bf16.msra.mxu1 %v5246_v10  ;;  %v5338_v9 = vld [vmem:[#allocation7 + $0x3ec] ss:$16 sps:$4 sm:$0xff]   ;;  %v5333_v10 = vld [vmem:[#allocation7 + $0x3e0] ss:$16 sps:$4 sm:$0xff]  }
 0x21a   :  { %2725 = vmatprep.mubr.bf16.mxu0 %v1859_v8  ;;  %2811 = vmatprep.mubr.bf16.mxu1 %v1859_v8  ;;  %v5335_v8 = vld [vmem:[#allocation7 + $0x3e4] ss:$16 sps:$4 sm:$0xff]  }
 0x21b   :  { %2695 = vmatprep.subr.bf16.mxu0 %v5251_v11  ;;  %2781 = vmatprep.subr.bf16.mxu1 %v5254_v12  ;;  %v5336_v11 = vld [vmem:[#allocation7 + $0x3e8] ss:$16 sps:$4 sm:$0xff]   ;;  %v5341_v12 = vld [vmem:[#allocation8 + $0x4] ss:$16 sps:$4 sm:$0xff]  }
 0x21d   :  { %2696 = vmatpush1.bf16.msra.mxu0 %v5249_v13  ;;  %2782 = vmatpush1.bf16.msra.mxu1 %v5252_v14  ;;  %v5344_v13 = vld [vmem:[#allocation8 + $0xc] ss:$16 sps:$4 sm:$0xff]   ;;  %v5339_v14 = vld [vmem:[#allocation8] ss:$16 sps:$4 sm:$0xff]  }
 0x21e   :  { %2697 = vmatprep.subr.bf16.mxu0 %v5257_v15  ;;  %2783 = vmatprep.subr.bf16.mxu1 %v5260_v16  ;;  %v5342_v15 = vld [vmem:[#allocation8 + $0x8] ss:$16 sps:$4 sm:$0xff]   ;;  %v5347_v16 = vld [vmem:[#allocation8 + $0x24] ss:$16 sps:$4 sm:$0xff]  }
 0x221   :  { %2698 = vmatpush1.bf16.msra.mxu0 %v5255_v17  ;;  %2784 = vmatpush1.bf16.msra.mxu1 %v5258_v18  ;;  %v5350_v17 = vld [vmem:[#allocation8 + $0x2c] ss:$16 sps:$4 sm:$0xff]   ;;  %v5345_v18 = vld [vmem:[#allocation8 + $0x20] ss:$16 sps:$4 sm:$0xff]  }
 0x222   :  { %2699 = vmatprep.subr.bf16.mxu0 %v5263_v19  ;;  %2785 = vmatprep.subr.bf16.mxu1 %v5266_v20  ;;  %v5348_v19 = vld [vmem:[#allocation8 + $0x28] ss:$16 sps:$4 sm:$0xff]   ;;  %v5353_v20 = vld [vmem:[#allocation8 + $0x44] ss:$16 sps:$4 sm:$0xff]  }
 0x225   :  { %2700 = vmatpush1.bf16.msra.mxu0 %v5261_v21  ;;  %2786 = vmatpush1.bf16.msra.mxu1 %v5264_v22  ;;  %v5356_v21 = vld [vmem:[#allocation8 + $0x4c] ss:$16 sps:$4 sm:$0xff]   ;;  %v5351_v22 = vld [vmem:[#allocation8 + $0x40] ss:$16 sps:$4 sm:$0xff]  }
 0x226   :  { %2701 = vmatprep.subr.bf16.mxu0 %v5269_v23  ;;  %2787 = vmatprep.subr.bf16.mxu1 %v5272_v24  ;;  %v5354_v23 = vld [vmem:[#allocation8 + $0x48] ss:$16 sps:$4 sm:$0xff]   ;;  %v5359_v24 = vld [vmem:[#allocation8 + $0x64] ss:$16 sps:$4 sm:$0xff]  }
 0x229   :  { %2702 = vmatpush1.bf16.msra.mxu0 %v5267_v25  ;;  %2788 = vmatpush1.bf16.msra.mxu1 %v5270_v26  ;;  %v5362_v25 = vld [vmem:[#allocation8 + $0x6c] ss:$16 sps:$4 sm:$0xff]   ;;  %v5357_v26 = vld [vmem:[#allocation8 + $0x60] ss:$16 sps:$4 sm:$0xff]  }
 0x22a   :  { %2703 = vmatprep.subr.bf16.mxu0 %v5275_v27  ;;  %2789 = vmatprep.subr.bf16.mxu1 %v5278_v28  ;;  %v5365_v27 = vld [vmem:[#allocation8 + $0x84] ss:$16 sps:$4 sm:$0xff]   ;;  %v5368_v28 = vld [vmem:[#allocation8 + $0x8c] ss:$16 sps:$4 sm:$0xff]  }
 0x22d   :  { %2704 = vmatpush1.bf16.msra.mxu0 %v5273_v29  ;;  %2790 = vmatpush1.bf16.msra.mxu1 %v5276_v30  ;;  %v5363_v29 = vld [vmem:[#allocation8 + $0x80] ss:$16 sps:$4 sm:$0xff]   ;;  %v5366_v30 = vld [vmem:[#allocation8 + $0x88] ss:$16 sps:$4 sm:$0xff]  }
 0x22e   :  { %2705 = vmatprep.subr.bf16.mxu0 %v5281_v31  ;;  %2791 = vmatprep.subr.bf16.mxu1 %v5284_v32  ;;  %v5371_v31 = vld [vmem:[#allocation8 + $0xa4] ss:$16 sps:$4 sm:$0xff]   ;;  %v5374_v32 = vld [vmem:[#allocation8 + $0xac] ss:$16 sps:$4 sm:$0xff]  }
 0x231   :  { %2706 = vmatpush1.bf16.msra.mxu0 %v5279_v33  ;;  %2792 = vmatpush1.bf16.msra.mxu1 %v5282_v34  ;;  %v5369_v33 = vld [vmem:[#allocation8 + $0xa0] ss:$16 sps:$4 sm:$0xff]   ;;  %v5372_v34 = vld [vmem:[#allocation8 + $0xa8] ss:$16 sps:$4 sm:$0xff]  }
 0x232   :  { %2707 = vmatprep.subr.bf16.mxu0 %v5287_v35  ;;  %2793 = vmatprep.subr.bf16.mxu1 %v5290_v36  ;;  %v5377_v35 = vld [vmem:[#allocation8 + $0xc4] ss:$16 sps:$4 sm:$0xff]   ;;  %v5380_v36 = vld [vmem:[#allocation8 + $0xcc] ss:$16 sps:$4 sm:$0xff]  }
 0x235   :  { %2708 = vmatpush1.bf16.msra.mxu0 %v5285_v37  ;;  %2794 = vmatpush1.bf16.msra.mxu1 %v5288_v38  ;;  %v5375_v37 = vld [vmem:[#allocation8 + $0xc0] ss:$16 sps:$4 sm:$0xff]   ;;  %v5378_v38 = vld [vmem:[#allocation8 + $0xc8] ss:$16 sps:$4 sm:$0xff]  }
 0x236   :  { %2709 = vmatprep.subr.bf16.mxu0 %v5293_v39  ;;  %2795 = vmatprep.subr.bf16.mxu1 %v5296_v40  ;;  %v5383_v39 = vld [vmem:[#allocation8 + $0xe4] ss:$16 sps:$4 sm:$0xff]   ;;  %v5386_v40 = vld [vmem:[#allocation8 + $0xec] ss:$16 sps:$4 sm:$0xff]  }
 0x239   :  { %2710 = vmatpush1.bf16.msra.mxu0 %v5291_v41  ;;  %2796 = vmatpush1.bf16.msra.mxu1 %v5294_v42  ;;  %v5381_v41 = vld [vmem:[#allocation8 + $0xe0] ss:$16 sps:$4 sm:$0xff]   ;;  %v5384_v42 = vld [vmem:[#allocation8 + $0xe8] ss:$16 sps:$4 sm:$0xff]  }
 0x23a   :  { %2711 = vmatprep.subr.bf16.mxu0 %v5299_v43  ;;  %2797 = vmatprep.subr.bf16.mxu1 %v5302_v46  ;;  %v5389_v43 = vld [vmem:[#allocation8 + $0x104] ss:$16 sps:$4 sm:$0xff]   ;;  %v5392_v46 = vld [vmem:[#allocation8 + $0x10c] ss:$16 sps:$4 sm:$0xff]  }
 0x23d   :  { %2712 = vmatpush1.bf16.msra.mxu0 %v5297_v49  ;;  %2798 = vmatpush1.bf16.msra.mxu1 %v5300_v50  ;;  %v5387_v49 = vld [vmem:[#allocation8 + $0x100] ss:$16 sps:$4 sm:$0xff]   ;;  %v5390_v50 = vld [vmem:[#allocation8 + $0x108] ss:$16 sps:$4 sm:$0xff]  }
 0x23e   :  { %2713 = vmatprep.subr.bf16.mxu0 %v5305_v51  ;;  %2799 = vmatprep.subr.bf16.mxu1 %v5308_v52  ;;  %v5395_v51 = vld [vmem:[#allocation8 + $0x124] ss:$16 sps:$4 sm:$0xff]   ;;  %v5398_v52 = vld [vmem:[#allocation8 + $0x12c] ss:$16 sps:$4 sm:$0xff]  }
 0x241   :  { %2714 = vmatpush1.bf16.msra.mxu0 %v5303_v53  ;;  %2800 = vmatpush1.bf16.msra.mxu1 %v5306_v54  ;;  %v5393_v53 = vld [vmem:[#allocation8 + $0x120] ss:$16 sps:$4 sm:$0xff]   ;;  %v5396_v54 = vld [vmem:[#allocation8 + $0x128] ss:$16 sps:$4 sm:$0xff]  }
 0x242   :  { %2715 = vmatprep.subr.bf16.mxu0 %v5311_v55  ;;  %2801 = vmatprep.subr.bf16.mxu1 %v5314_v56  ;;  %v5401_v55 = vld [vmem:[#allocation8 + $0x144] ss:$16 sps:$4 sm:$0xff]   ;;  %v5404_v56 = vld [vmem:[#allocation8 + $0x14c] ss:$16 sps:$4 sm:$0xff]  }
 0x245   :  { %2716 = vmatpush1.bf16.msra.mxu0 %v5309_v57  ;;  %2802 = vmatpush1.bf16.msra.mxu1 %v5312_v58  ;;  %v5399_v57 = vld [vmem:[#allocation8 + $0x140] ss:$16 sps:$4 sm:$0xff]   ;;  %v5402_v58 = vld [vmem:[#allocation8 + $0x148] ss:$16 sps:$4 sm:$0xff]  }
 0x246   :  { %2717 = vmatprep.subr.bf16.mxu0 %v5317_v59  ;;  %2803 = vmatprep.subr.bf16.mxu1 %v5320_v60  ;;  %v5407_v59 = vld [vmem:[#allocation8 + $0x164] ss:$16 sps:$4 sm:$0xff]   ;;  %v5410_v60 = vld [vmem:[#allocation8 + $0x16c] ss:$16 sps:$4 sm:$0xff]  }
 0x249   :  { %2718 = vmatpush1.bf16.msra.mxu0 %v5315_v61  ;;  %2804 = vmatpush1.bf16.msra.mxu1 %v5318_v62  ;;  %v5405_v61 = vld [vmem:[#allocation8 + $0x160] ss:$16 sps:$4 sm:$0xff]   ;;  %v5408_v62 = vld [vmem:[#allocation8 + $0x168] ss:$16 sps:$4 sm:$0xff]  }
 0x24a   :  { %2719 = vmatprep.subr.bf16.mxu0 %v5323_v63  ;;  %2805 = vmatprep.subr.bf16.mxu1 %v5326_v0  ;;  %v5413_v63 = vld [vmem:[#allocation8 + $0x184] ss:$16 sps:$4 sm:$0xff]   ;;  %v5416_v0 = vld [vmem:[#allocation8 + $0x18c] ss:$16 sps:$4 sm:$0xff]  }
 0x24d   :  { %2720 = vmatpush1.bf16.msra.mxu0 %v5321_v1  ;;  %2806 = vmatpush1.bf16.msra.mxu1 %v5324_v2  ;;  %v5411_v1 = vld [vmem:[#allocation8 + $0x180] ss:$16 sps:$4 sm:$0xff]   ;;  %v5414_v2 = vld [vmem:[#allocation8 + $0x188] ss:$16 sps:$4 sm:$0xff]  }
 0x24e   :  { %2721 = vmatprep.subr.bf16.mxu0 %v5329_v3  ;;  %2807 = vmatprep.subr.bf16.mxu1 %v5332_v4  ;;  %v5419_v3 = vld [vmem:[#allocation8 + $0x1a4] ss:$16 sps:$4 sm:$0xff]   ;;  %v5422_v4 = vld [vmem:[#allocation8 + $0x1ac] ss:$16 sps:$4 sm:$0xff]  }
 0x251   :  { %2722 = vmatpush1.bf16.msra.mxu0 %v5327_v5  ;;  %2808 = vmatpush1.bf16.msra.mxu1 %v5330_v7  ;;  %v5417_v5 = vld [vmem:[#allocation8 + $0x1a0] ss:$16 sps:$4 sm:$0xff]   ;;  %v5420_v7 = vld [vmem:[#allocation8 + $0x1a8] ss:$16 sps:$4 sm:$0xff]  }
 0x252   :  { %2723 = vmatprep.subr.bf16.mxu0 %v5335_v8  ;;  %2809 = vmatprep.subr.bf16.mxu1 %v5338_v9  ;;  %v5425_v8 = vld [vmem:[#allocation8 + $0x1c4] ss:$16 sps:$4 sm:$0xff]   ;;  %v5428_v9 = vld [vmem:[#allocation8 + $0x1cc] ss:$16 sps:$4 sm:$0xff]  }
 0x255   :  { %2724 = vmatpush1.bf16.msra.mxu0 %v5333_v10  ;;  %2810 = vmatpush1.bf16.msra.mxu1 %v5336_v11  ;;  %v5423_v10 = vld [vmem:[#allocation8 + $0x1c0] ss:$16 sps:$4 sm:$0xff]   ;;  %v5426_v11 = vld [vmem:[#allocation8 + $0x1c8] ss:$16 sps:$4 sm:$0xff]  }
 0x256   :  { %3616 = vmatprep.subr.bf16.mxu0 %v5341_v12  ;;  %3702 = vmatprep.subr.bf16.mxu1 %v5344_v13  ;;  %v5431_v12 = vld [vmem:[#allocation8 + $0x1e4] ss:$16 sps:$4 sm:$0xff]   ;;  %v5434_v13 = vld [vmem:[#allocation8 + $0x1ec] ss:$16 sps:$4 sm:$0xff]  }
 0x258   :  { %2726 = vmatmul.mubr.bf16.vlgmr.msra.gmra.mrb[4].mxu0 %v5852_v6  ;;  %2812 = vmatmul.mubr.bf16.vlgmr.msra.gmra.mrb[4].mxu1 %v5852_v6  ;;  %v5360_v6 = vld [vmem:[#allocation8 + $0x68] ss:$16 sps:$4 sm:$0xff]  }
 0x259   :  { %3617 = vmatpush1.bf16.msra.mxu0 %v5339_v14  ;;  %3703 = vmatpush1.bf16.msra.mxu1 %v5342_v15  ;;  %v5429_v14 = vld [vmem:[#allocation8 + $0x1e0] ss:$16 sps:$4 sm:$0xff]   ;;  %v5432_v15 = vld [vmem:[#allocation8 + $0x1e8] ss:$16 sps:$4 sm:$0xff]  }
 0x25a   :  { %3618 = vmatprep.subr.bf16.mxu0 %v5347_v16  ;;  %3704 = vmatprep.subr.bf16.mxu1 %v5350_v17  ;;  %v5437_v16 = vld [vmem:[#allocation8 + $0x204] ss:$16 sps:$4 sm:$0xff]   ;;  %v5440_v17 = vld [vmem:[#allocation8 + $0x20c] ss:$16 sps:$4 sm:$0xff]  }
 0x25d   :  { %3619 = vmatpush1.bf16.msra.mxu0 %v5345_v18  ;;  %3705 = vmatpush1.bf16.msra.mxu1 %v5348_v19  ;;  %v1988_v18 = vld [vmem:[%s5893_s4] sm:$0xf] }
 0x25e   :  { %3620 = vmatprep.subr.bf16.mxu0 %v5353_v20  ;;  %3706 = vmatprep.subr.bf16.mxu1 %v5356_v21  ;;  %v1993_v19 = vrot.slane %v1988_v18, %v5837_v44  ;;  %v2001_v20 = vrot.slane %v1988_v18, %v5839_v45 }
 0x261   :  { %3621 = vmatpush1.bf16.msra.mxu0 %v5351_v22  ;;  %3707 = vmatpush1.bf16.msra.mxu1 %v5354_v23  ;;  %v1997_v23 = vrot.slane %v1988_v18, %v5844_v47 }
 0x262   :  { %3622 = vmatprep.subr.bf16.mxu0 %v5359_v24  ;;  %3708 = vmatprep.subr.bf16.mxu1 %v5362_v25  ;;  %v2005_v24 = vrot.slane %v1988_v18, %v5846_v48  ;;  %v5494_v18 = vld [vmem:[#allocation8 + $0x32c] ss:$16 sps:$4 sm:$0xff]  }
 0x265   :  { %3623 = vmatpush1.bf16.msra.mxu0 %v5357_v26  ;;  %3709 = vmatpush1.bf16.msra.mxu1 %v5360_v6 }
 0x266   :  { %3624 = vmatprep.subr.bf16.mxu0 %v5365_v27  ;;  %3710 = vmatprep.subr.bf16.mxu1 %v5368_v28 }
 0x269   :  { %3625 = vmatpush1.bf16.msra.mxu0 %v5363_v29  ;;  %3711 = vmatpush1.bf16.msra.mxu1 %v5366_v30 }
 0x26a   :  { %3626 = vmatprep.subr.bf16.mxu0 %v5371_v31  ;;  %3712 = vmatprep.subr.bf16.mxu1 %v5374_v32 }
 0x26d   :  { %3627 = vmatpush1.bf16.msra.mxu0 %v5369_v33  ;;  %3713 = vmatpush1.bf16.msra.mxu1 %v5372_v34 }
 0x26e   :  { %3628 = vmatprep.subr.bf16.mxu0 %v5377_v35  ;;  %3714 = vmatprep.subr.bf16.mxu1 %v5380_v36 }
 0x271   :  { %3629 = vmatpush1.bf16.msra.mxu0 %v5375_v37  ;;  %3715 = vmatpush1.bf16.msra.mxu1 %v5378_v38 }
 0x272   :  { %3630 = vmatprep.subr.bf16.mxu0 %v5383_v39  ;;  %3716 = vmatprep.subr.bf16.mxu1 %v5386_v40 }
 0x275   :  { %3631 = vmatpush1.bf16.msra.mxu0 %v5381_v41  ;;  %3717 = vmatpush1.bf16.msra.mxu1 %v5384_v42  ;;  %v5435_v42 = vld [vmem:[#allocation8 + $0x200] ss:$16 sps:$4 sm:$0xff]  }
 0x276   :  { %3632 = vmatprep.subr.bf16.mxu0 %v5389_v43  ;;  %3718 = vmatprep.subr.bf16.mxu1 %v5392_v46  ;;  %v5438_v43 = vld [vmem:[#allocation8 + $0x208] ss:$16 sps:$4 sm:$0xff]   ;;  %v5443_v46 = vld [vmem:[#allocation8 + $0x224] ss:$16 sps:$4 sm:$0xff]  }
 0x279   :  { %3633 = vmatpush1.bf16.msra.mxu0 %v5387_v49  ;;  %3719 = vmatpush1.bf16.msra.mxu1 %v5390_v50  ;;  %v5446_v49 = vld [vmem:[#allocation8 + $0x22c] ss:$16 sps:$4 sm:$0xff]   ;;  %v5441_v50 = vld [vmem:[#allocation8 + $0x220] ss:$16 sps:$4 sm:$0xff]  }
 0x27a   :  { %3634 = vmatprep.subr.bf16.mxu0 %v5395_v51  ;;  %3720 = vmatprep.subr.bf16.mxu1 %v5398_v52  ;;  %v5444_v51 = vld [vmem:[#allocation8 + $0x228] ss:$16 sps:$4 sm:$0xff]   ;;  %v5449_v52 = vld [vmem:[#allocation8 + $0x244] ss:$16 sps:$4 sm:$0xff]  }
 0x27d   :  { %3635 = vmatpush1.bf16.msra.mxu0 %v5393_v53  ;;  %3721 = vmatpush1.bf16.msra.mxu1 %v5396_v54  ;;  %v5452_v53 = vld [vmem:[#allocation8 + $0x24c] ss:$16 sps:$4 sm:$0xff]   ;;  %v5447_v54 = vld [vmem:[#allocation8 + $0x240] ss:$16 sps:$4 sm:$0xff]  }
 0x27e   :  { %3636 = vmatprep.subr.bf16.mxu0 %v5401_v55  ;;  %3722 = vmatprep.subr.bf16.mxu1 %v5404_v56  ;;  %v5450_v55 = vld [vmem:[#allocation8 + $0x248] ss:$16 sps:$4 sm:$0xff]   ;;  %v5455_v56 = vld [vmem:[#allocation8 + $0x264] ss:$16 sps:$4 sm:$0xff]  }
 0x281   :  { %3637 = vmatpush1.bf16.msra.mxu0 %v5399_v57  ;;  %3723 = vmatpush1.bf16.msra.mxu1 %v5402_v58  ;;  %v5458_v57 = vld [vmem:[#allocation8 + $0x26c] ss:$16 sps:$4 sm:$0xff]   ;;  %v5453_v58 = vld [vmem:[#allocation8 + $0x260] ss:$16 sps:$4 sm:$0xff]  }
 0x282   :  { %3638 = vmatprep.subr.bf16.mxu0 %v5407_v59  ;;  %3724 = vmatprep.subr.bf16.mxu1 %v5410_v60  ;;  %v5456_v59 = vld [vmem:[#allocation8 + $0x268] ss:$16 sps:$4 sm:$0xff]   ;;  %v5461_v60 = vld [vmem:[#allocation8 + $0x284] ss:$16 sps:$4 sm:$0xff]  }
 0x285   :  { %3639 = vmatpush1.bf16.msra.mxu0 %v5405_v61  ;;  %3725 = vmatpush1.bf16.msra.mxu1 %v5408_v62  ;;  %v5464_v61 = vld [vmem:[#allocation8 + $0x28c] ss:$16 sps:$4 sm:$0xff]   ;;  %v5459_v62 = vld [vmem:[#allocation8 + $0x280] ss:$16 sps:$4 sm:$0xff]  }
 0x286   :  { %3640 = vmatprep.subr.bf16.mxu0 %v5413_v63  ;;  %3726 = vmatprep.subr.bf16.mxu1 %v5416_v0  ;;  %v5462_v63 = vld [vmem:[#allocation8 + $0x288] ss:$16 sps:$4 sm:$0xff]   ;;  %v5467_v0 = vld [vmem:[#allocation8 + $0x2a4] ss:$16 sps:$4 sm:$0xff]  }
 0x289   :  { %3641 = vmatpush1.bf16.msra.mxu0 %v5411_v1  ;;  %3727 = vmatpush1.bf16.msra.mxu1 %v5414_v2  ;;  %v5470_v1 = vld [vmem:[#allocation8 + $0x2ac] ss:$16 sps:$4 sm:$0xff]   ;;  %v5465_v2 = vld [vmem:[#allocation8 + $0x2a0] ss:$16 sps:$4 sm:$0xff]  }
 0x28a   :  { %3642 = vmatprep.subr.bf16.mxu0 %v5419_v3  ;;  %3728 = vmatprep.subr.bf16.mxu1 %v5422_v4  ;;  %v5468_v3 = vld [vmem:[#allocation8 + $0x2a8] ss:$16 sps:$4 sm:$0xff]   ;;  %v5473_v4 = vld [vmem:[#allocation8 + $0x2c4] ss:$16 sps:$4 sm:$0xff]  }
 0x28d   :  { %3643 = vmatpush1.bf16.msra.mxu0 %v5417_v5  ;;  %3729 = vmatpush1.bf16.msra.mxu1 %v5420_v7  ;;  %v5476_v5 = vld [vmem:[#allocation8 + $0x2cc] ss:$16 sps:$4 sm:$0xff]   ;;  %v5471_v7 = vld [vmem:[#allocation8 + $0x2c0] ss:$16 sps:$4 sm:$0xff]  }
 0x28e   :  { %3644 = vmatprep.subr.bf16.mxu0 %v5425_v8  ;;  %3730 = vmatprep.subr.bf16.mxu1 %v5428_v9  ;;  %v5474_v8 = vld [vmem:[#allocation8 + $0x2c8] ss:$16 sps:$4 sm:$0xff]   ;;  %v5479_v9 = vld [vmem:[#allocation8 + $0x2e4] ss:$16 sps:$4 sm:$0xff]  }
 0x291   :  { %3645 = vmatpush1.bf16.msra.mxu0 %v5423_v10  ;;  %3731 = vmatpush1.bf16.msra.mxu1 %v5426_v11  ;;  %v5482_v10 = vld [vmem:[#allocation8 + $0x2ec] ss:$16 sps:$4 sm:$0xff]   ;;  %v5477_v11 = vld [vmem:[#allocation8 + $0x2e0] ss:$16 sps:$4 sm:$0xff]  }
 0x292   :  { %3646 = vmatprep.subr.bf16.mxu0 %v5431_v12  ;;  %3732 = vmatprep.subr.bf16.mxu1 %v5434_v13  ;;  %v5480_v12 = vld [vmem:[#allocation8 + $0x2e8] ss:$16 sps:$4 sm:$0xff]   ;;  %v5485_v13 = vld [vmem:[#allocation8 + $0x304] ss:$16 sps:$4 sm:$0xff]  }
 0x295   :  { %3647 = vmatpush1.bf16.msra.mxu0 %v5429_v14  ;;  %3733 = vmatpush1.bf16.msra.mxu1 %v5432_v15  ;;  %v5488_v14 = vld [vmem:[#allocation8 + $0x30c] ss:$16 sps:$4 sm:$0xff]   ;;  %v5483_v15 = vld [vmem:[#allocation8 + $0x300] ss:$16 sps:$4 sm:$0xff]  }
 0x296   :  { %3659 = vmatprep.subr.bf16.mxu0 %v5437_v16  ;;  %3745 = vmatprep.subr.bf16.mxu1 %v5440_v17  ;;  %v5486_v16 = vld [vmem:[#allocation8 + $0x308] ss:$16 sps:$4 sm:$0xff]   ;;  %v5491_v17 = vld [vmem:[#allocation8 + $0x324] ss:$16 sps:$4 sm:$0xff]  }
 0x32b   :  { %v2727_v21 = vpop.f32.mrb[4].mxu0  ;;  %v2813_v22 = vpop.f32.mrb[4].mxu1 }
 0x32c   :  { %v2729_v25 = vpop.f32.mrb[5].mxu0  ;;  %v2815_v26 = vpop.f32.mrb[5].mxu1  ;;  %v4730_v28 = vadd.f32 %v2727_v21, %v1993_v19  ;;  %v4734_v29 = vadd.f32 %v2813_v22, %v2001_v20  ;;  %v5497_v21 = vld [vmem:[#allocation8 + $0x344] ss:$16 sps:$4 sm:$0xff]   ;;  %v5500_v22 = vld [vmem:[#allocation8 + $0x34c] ss:$16 sps:$4 sm:$0xff]  }
 0x32d   :  { %v2731_v6 = vpop.f32.mrb[6].mxu0  ;;  %v2817_v27 = vpop.f32.mrb[6].mxu1  ;;  %v4731_v34 = vadd.f32 %v2729_v25, %v1997_v23  ;;  %v4735_v35 = vadd.f32 %v2815_v26, %v2005_v24  ;;  %v5503_v25 = vld [vmem:[#allocation8 + $0x364] ss:$16 sps:$4 sm:$0xff]   ;;  %v5506_v26 = vld [vmem:[#allocation8 + $0x36c] ss:$16 sps:$4 sm:$0xff]  }
 0x32e   :  { %v4732_v30 = vadd.f32 %v2731_v6, %v1993_v19  ;;  %v4736_v31 = vadd.f32 %v2817_v27, %v2001_v20  ;;  %v2733_v32 = vpop.f32.mrb[7].mxu0  ;;  %v2819_v33 = vpop.f32.mrb[7].mxu1  ;;  %v5489_v19 = vld [vmem:[#allocation8 + $0x320] ss:$16 sps:$4 sm:$0xff]   ;;  %v5492_v20 = vld [vmem:[#allocation8 + $0x328] ss:$16 sps:$4 sm:$0xff]  }
 0x32f   :  { %v4733_v36 = vadd.f32 %v2733_v32, %v1997_v23  ;;  %v4737_v37 = vadd.f32 %v2819_v33, %v2005_v24  ;;  %v5495_v23 = vld [vmem:[#allocation8 + $0x340] ss:$16 sps:$4 sm:$0xff]   ;;  %v5498_v24 = vld [vmem:[#allocation8 + $0x348] ss:$16 sps:$4 sm:$0xff]   ;;  %v5515_v32 = vld [vmem:[#allocation8 + $0x3a4] ss:$16 sps:$4 sm:$0xff]  }
 0x330   :  { %v2822_v38 = vpack.c.bf16 %v4732_v30, %v4730_v28  ;;  %v5863_v39 = vpack.c.bf16 %v4736_v31, %v4734_v29  ;;  %v5501_v6 = vld [vmem:[#allocation8 + $0x360] ss:$16 sps:$4 sm:$0xff]   ;;  %v5504_v27 = vld [vmem:[#allocation8 + $0x368] ss:$16 sps:$4 sm:$0xff]   ;;  %v5509_v28 = vld [vmem:[#allocation8 + $0x384] ss:$16 sps:$4 sm:$0xff]  }
 0x331   :  { %v2823_v40 = vpack.c.bf16 %v4733_v36, %v4731_v34  ;;  %v2825_v41 = vpack.c.bf16 %v4737_v37, %v4735_v35  ;;  %v5512_v29 = vld [vmem:[#allocation8 + $0x38c] ss:$16 sps:$4 sm:$0xff]   ;;  %v5507_v30 = vld [vmem:[#allocation8 + $0x380] ss:$16 sps:$4 sm:$0xff]   ;;  %v5510_v31 = vld [vmem:[#allocation8 + $0x388] ss:$16 sps:$4 sm:$0xff]  }
 0x332   :  { %v5518_v33 = vld [vmem:[#allocation8 + $0x3ac] ss:$16 sps:$4 sm:$0xff]   ;;  %v5513_v34 = vld [vmem:[#allocation8 + $0x3a0] ss:$16 sps:$4 sm:$0xff]   ;;  %v5516_v35 = vld [vmem:[#allocation8 + $0x3a8] ss:$16 sps:$4 sm:$0xff]  }
 0x333   :  { %3648 = vmatprep.mubr.bf16.mxu0 %v2823_v40  ;;  %3734 = vmatprep.mubr.bf16.mxu1 %v2823_v40  ;;  %v5521_v36 = vld [vmem:[#allocation8 + $0x3c4] ss:$16 sps:$4 sm:$0xff]   ;;  %v5524_v37 = vld [vmem:[#allocation8 + $0x3cc] ss:$16 sps:$4 sm:$0xff]   ;;  %v5522_v40 = vld [vmem:[#allocation8 + $0x3c8] ss:$16 sps:$4 sm:$0xff]  }
 0x334   :  { %3649 = vmatmul.mubr.bf16.vlgmr.msra.gmra.mrb[8].mxu0 %v2822_v38  ;;  %3735 = vmatmul.mubr.bf16.vlgmr.msra.gmra.mrb[8].mxu1 %v2822_v38  ;;  %v5519_v38 = vld [vmem:[#allocation8 + $0x3c0] ss:$16 sps:$4 sm:$0xff]  }
 0x335   :  { %3660 = vmatpush1.bf16.msra.mxu0 %v5435_v42  ;;  %3746 = vmatpush1.bf16.msra.mxu1 %v5438_v43  ;;  %v5530_v42 = vld [vmem:[#allocation8 + $0x3ec] ss:$16 sps:$4 sm:$0xff]   ;;  %v5525_v43 = vld [vmem:[#allocation8 + $0x3e0] ss:$16 sps:$4 sm:$0xff]  }
 0x336   :  { %3691 = vmatprep.mubr.bf16.mxu0 %v2825_v41  ;;  %3777 = vmatprep.mubr.bf16.mxu1 %v2825_v41  ;;  %v5527_v41 = vld [vmem:[#allocation8 + $0x3e4] ss:$16 sps:$4 sm:$0xff]  }
 0x337   :  { %3661 = vmatprep.subr.bf16.mxu0 %v5443_v46  ;;  %3747 = vmatprep.subr.bf16.mxu1 %v5446_v49  ;;  %v5528_v46 = vld [vmem:[#allocation8 + $0x3e8] ss:$16 sps:$4 sm:$0xff]   ;;  %v5531_v49 = vld [vmem:[#allocation10 + $0x40] sm:$0xff]  }
 0x339   :  { %3662 = vmatpush1.bf16.msra.mxu0 %v5441_v50  ;;  %3748 = vmatpush1.bf16.msra.mxu1 %v5444_v51  ;;  %v5532_v50 = vld [vmem:[#allocation10 + $0xc0] sm:$0xff]  }
 0x33a   :  { %3663 = vmatprep.subr.bf16.mxu0 %v5449_v52  ;;  %3749 = vmatprep.subr.bf16.mxu1 %v5452_v53  ;;  %v5533_v51 = vld [vmem:[#allocation10] sm:$0xff]   ;;  %v5535_v53 = vld [vmem:[#allocation10 + $0x48] sm:$0xff]  }
 0x33b   :  { %v5534_v52 = vld [vmem:[#allocation10 + $0x80] sm:$0xff]  }
 0x33d   :  { %3664 = vmatpush1.bf16.msra.mxu0 %v5447_v54  ;;  %3750 = vmatpush1.bf16.msra.mxu1 %v5450_v55  ;;  %v5536_v54 = vld [vmem:[#allocation10 + $0xc8] sm:$0xff]  }
 0x33e   :  { %3665 = vmatprep.subr.bf16.mxu0 %v5455_v56  ;;  %3751 = vmatprep.subr.bf16.mxu1 %v5458_v57  ;;  %v5537_v55 = vld [vmem:[#allocation10 + $0x8] sm:$0xff]   ;;  %v5539_v57 = vld [vmem:[#allocation10 + $0x50] sm:$0xff]  }
 0x33f   :  { %v5538_v56 = vld [vmem:[#allocation10 + $0x88] sm:$0xff]  }
 0x341   :  { %3666 = vmatpush1.bf16.msra.mxu0 %v5453_v58  ;;  %3752 = vmatpush1.bf16.msra.mxu1 %v5456_v59  ;;  %v5540_v58 = vld [vmem:[#allocation10 + $0xd0] sm:$0xff]  }
 0x342   :  { %3667 = vmatprep.subr.bf16.mxu0 %v5461_v60  ;;  %3753 = vmatprep.subr.bf16.mxu1 %v5464_v61  ;;  %v5541_v59 = vld [vmem:[#allocation10 + $0x10] sm:$0xff]   ;;  %v5543_v61 = vld [vmem:[#allocation10 + $0x58] sm:$0xff]  }
 0x343   :  { %v5542_v60 = vld [vmem:[#allocation10 + $0x90] sm:$0xff]  }
 0x345   :  { %3668 = vmatpush1.bf16.msra.mxu0 %v5459_v62  ;;  %3754 = vmatpush1.bf16.msra.mxu1 %v5462_v63  ;;  %v5544_v62 = vld [vmem:[#allocation10 + $0xd8] sm:$0xff]  }
 0x346   :  { %3669 = vmatprep.subr.bf16.mxu0 %v5467_v0  ;;  %3755 = vmatprep.subr.bf16.mxu1 %v5470_v1  ;;  %v5545_v63 = vld [vmem:[#allocation10 + $0x18] sm:$0xff]   ;;  %v5547_v0 = vld [vmem:[#allocation10 + $0x60] sm:$0xff]  }
 0x347   :  { %v5548_v1 = vld [vmem:[#allocation10 + $0xe0] sm:$0xff]  }
 0x349   :  { %3670 = vmatpush1.bf16.msra.mxu0 %v5465_v2  ;;  %3756 = vmatpush1.bf16.msra.mxu1 %v5468_v3  ;;  %v5549_v2 = vld [vmem:[#allocation10 + $0x20] sm:$0xff]  }
 0x34a   :  { %3671 = vmatprep.subr.bf16.mxu0 %v5473_v4  ;;  %3757 = vmatprep.subr.bf16.mxu1 %v5476_v5  ;;  %v5550_v3 = vld [vmem:[#allocation10 + $0xa0] sm:$0xff]   ;;  %v5551_v4 = vld [vmem:[#allocation10 + $0x68] sm:$0xff]  }
 0x34b   :  { %v5552_v5 = vld [vmem:[#allocation10 + $0xe8] sm:$0xff]  }
 0x34d   :  { %3672 = vmatpush1.bf16.msra.mxu0 %v5471_v7  ;;  %3758 = vmatpush1.bf16.msra.mxu1 %v5474_v8  ;;  %v5553_v7 = vld [vmem:[#allocation10 + $0x28] sm:$0xff]  }
 0x34e   :  { %3673 = vmatprep.subr.bf16.mxu0 %v5479_v9  ;;  %3759 = vmatprep.subr.bf16.mxu1 %v5482_v10  ;;  %v5554_v8 = vld [vmem:[#allocation10 + $0xa8] sm:$0xff]   ;;  %v5555_v9 = vld [vmem:[#allocation10 + $0x70] sm:$0xff]  }
 0x34f   :  { %v5556_v10 = vld [vmem:[#allocation10 + $0xf0] sm:$0xff]  }
 0x351   :  { %3674 = vmatpush1.bf16.msra.mxu0 %v5477_v11  ;;  %3760 = vmatpush1.bf16.msra.mxu1 %v5480_v12  ;;  %v5557_v11 = vld [vmem:[#allocation10 + $0x30] sm:$0xff]  }
 0x352   :  { %3675 = vmatprep.subr.bf16.mxu0 %v5485_v13  ;;  %3761 = vmatprep.subr.bf16.mxu1 %v5488_v14  ;;  %v5558_v12 = vld [vmem:[#allocation10 + $0xb0] sm:$0xff]   ;;  %v5559_v13 = vld [vmem:[#allocation10 + $0x78] sm:$0xff]  }
 0x353   :  { %v5560_v14 = vld [vmem:[#allocation10 + $0xf8] sm:$0xff]  }
 0x355   :  { %3676 = vmatpush1.bf16.msra.mxu0 %v5483_v15  ;;  %3762 = vmatpush1.bf16.msra.mxu1 %v5486_v16  ;;  %v5561_v15 = vld [vmem:[#allocation10 + $0x38] sm:$0xff]  }
 0x356   :  { %3677 = vmatprep.subr.bf16.mxu0 %v5491_v17  ;;  %3763 = vmatprep.subr.bf16.mxu1 %v5494_v18  ;;  %v5562_v16 = vld [vmem:[#allocation10 + $0xb8] sm:$0xff]   ;;  %v2954_v17 = vld [vmem:[%s5895_s6] sm:$0xf] }
 0x357   :  { %v2959_v18 = vrot.slane %v2954_v17, %v5837_v44 }
 0x359   :  { %3678 = vmatpush1.bf16.msra.mxu0 %v5489_v19  ;;  %3764 = vmatpush1.bf16.msra.mxu1 %v5492_v20  ;;  %v2967_v19 = vrot.slane %v2954_v17, %v5839_v45 }
 0x35a   :  { %3679 = vmatprep.subr.bf16.mxu0 %v5497_v21  ;;  %3765 = vmatprep.subr.bf16.mxu1 %v5500_v22  ;;  %v2963_v22 = vrot.slane %v2954_v17, %v5844_v47 }
 0x35d   :  { %3680 = vmatpush1.bf16.msra.mxu0 %v5495_v23  ;;  %3766 = vmatpush1.bf16.msra.mxu1 %v5498_v24  ;;  %v2971_v23 = vrot.slane %v2954_v17, %v5846_v48 }
 0x35e   :  { %3681 = vmatprep.subr.bf16.mxu0 %v5503_v25  ;;  %3767 = vmatprep.subr.bf16.mxu1 %v5506_v26 }
 0x361   :  { %3682 = vmatpush1.bf16.msra.mxu0 %v5501_v6  ;;  %3768 = vmatpush1.bf16.msra.mxu1 %v5504_v27 }
 0x362   :  { %3683 = vmatprep.subr.bf16.mxu0 %v5509_v28  ;;  %3769 = vmatprep.subr.bf16.mxu1 %v5512_v29 }
 0x365   :  { %3684 = vmatpush1.bf16.msra.mxu0 %v5507_v30  ;;  %3770 = vmatpush1.bf16.msra.mxu1 %v5510_v31 }
 0x366   :  { %3685 = vmatprep.subr.bf16.mxu0 %v5515_v32  ;;  %3771 = vmatprep.subr.bf16.mxu1 %v5518_v33 }
 0x369   :  { %3686 = vmatpush1.bf16.msra.mxu0 %v5513_v34  ;;  %3772 = vmatpush1.bf16.msra.mxu1 %v5516_v35 }
 0x36a   :  { %3687 = vmatprep.subr.bf16.mxu0 %v5521_v36  ;;  %3773 = vmatprep.subr.bf16.mxu1 %v5524_v37 }
 0x36d   :  { %3688 = vmatpush1.bf16.msra.mxu0 %v5519_v38  ;;  %3774 = vmatpush1.bf16.msra.mxu1 %v5522_v40  ;;  %v4645_v40 = vld [vmem:[%s5897_s8] ss:$0 sm:$0xff]  ;;  %s5673_s8 = scalar_lea.vmem %s4145_s10, 256 }
 0x36e   :  { %3689 = vmatprep.subr.bf16.mxu0 %v5527_v41  ;;  %3775 = vmatprep.subr.bf16.mxu1 %v5530_v42  ;;  %p5674_p12 = scmp.ne.s32.totalorder %s4145_s10, %s5673_s8  ;;  %p5679_p0 = scmp.lt.s32.totalorder %s5673_s8, %s5673_s8 }
 0x370   :  { %p5680_p1 = por %p5679_p0, %p5678_p13 }
 0x371   :  { %3690 = vmatpush1.bf16.msra.mxu0 %v5525_v43  ;;  %3776 = vmatpush1.bf16.msra.mxu1 %v5528_v46 }
 0x372   :  { %4678 = vmatprep.subr.bf16.mxu0 %v5531_v49  ;;  %4700 = vmatprep.subr.bf16.mxu1 %v5532_v50  ;;  %p5681_p2 = pnand %p5680_p1, %p5674_p12 }
 0x374   :  { %3692 = vmatmul.mubr.bf16.vlgmr.msra.gmra.mrb[8].mxu0 %v5863_v39  ;;  %3778 = vmatmul.mubr.bf16.vlgmr.msra.gmra.mrb[8].mxu1 %v5863_v39  ;;  %v5546_v39 = vld [vmem:[#allocation10 + $0x98] sm:$0xff]  }
 0x375   :  { %4679 = vmatpush3.bf16.msra.mxu0 %v5533_v51  ;;  %4701 = vmatpush3.bf16.msra.mxu1 %v5534_v52 }
 0x376   :  { %4680 = vmatprep.subr.bf16.mxu0 %v5535_v53  ;;  %4702 = vmatprep.subr.bf16.mxu1 %v5536_v54 }
 0x379   :  { %4681 = vmatpush3.bf16.msra.mxu0 %v5537_v55  ;;  %4703 = vmatpush3.bf16.msra.mxu1 %v5538_v56 }
 0x37a   :  { %4682 = vmatprep.subr.bf16.mxu0 %v5539_v57  ;;  %4704 = vmatprep.subr.bf16.mxu1 %v5540_v58 }
 0x37d   :  { %4683 = vmatpush3.bf16.msra.mxu0 %v5541_v59  ;;  %4705 = vmatpush3.bf16.msra.mxu1 %v5542_v60 }
 0x37e   :  { %4684 = vmatprep.subr.bf16.mxu0 %v5543_v61  ;;  %4706 = vmatprep.subr.bf16.mxu1 %v5544_v62 }
 0x381   :  { %4685 = vmatpush3.bf16.msra.mxu0 %v5545_v63  ;;  %4707 = vmatpush3.bf16.msra.mxu1 %v5546_v39 }
 0x382   :  { %4686 = vmatprep.subr.bf16.mxu0 %v5547_v0  ;;  %4708 = vmatprep.subr.bf16.mxu1 %v5548_v1 }
 0x385   :  { %4687 = vmatpush3.bf16.msra.mxu0 %v5549_v2  ;;  %4709 = vmatpush3.bf16.msra.mxu1 %v5550_v3 }
 0x386   :  { %4688 = vmatprep.subr.bf16.mxu0 %v5551_v4  ;;  %4710 = vmatprep.subr.bf16.mxu1 %v5552_v5 }
 0x389   :  { %4689 = vmatpush3.bf16.msra.mxu0 %v5553_v7  ;;  %4711 = vmatpush3.bf16.msra.mxu1 %v5554_v8 }
 0x38a   :  { %4690 = vmatprep.subr.bf16.mxu0 %v5555_v9  ;;  %4712 = vmatprep.subr.bf16.mxu1 %v5556_v10 }
 0x38d   :  { %4691 = vmatpush3.bf16.msra.mxu0 %v5557_v11  ;;  %4713 = vmatpush3.bf16.msra.mxu1 %v5558_v12 }
 0x38e   :  { %4692 = vmatprep.subr.bf16.mxu0 %v5559_v13  ;;  %4714 = vmatprep.subr.bf16.mxu1 %v5560_v14 }
 0x391   :  { %4693 = vmatpush3.bf16.msra.mxu0 %v5561_v15  ;;  %4715 = vmatpush3.bf16.msra.mxu1 %v5562_v16 }
 0x447   :  { %v3693_v20 = vpop.f32.mrb[8].mxu0  ;;  %v3779_v21 = vpop.f32.mrb[8].mxu1 }
 0x448   :  { %v3695_v24 = vpop.f32.mrb[9].mxu0  ;;  %v3781_v25 = vpop.f32.mrb[9].mxu1  ;;  %v4738_v27 = vadd.f32 %v3693_v20, %v2959_v18  ;;  %v4742_v28 = vadd.f32 %v3779_v21, %v2967_v19 }
 0x449   :  { %v3697_v26 = vpop.f32.mrb[10].mxu0  ;;  %v3783_v6 = vpop.f32.mrb[10].mxu1  ;;  %v4739_v33 = vadd.f32 %v3695_v24, %v2963_v22  ;;  %v4743_v44 = vadd.f32 %v3781_v25, %v2971_v23 }
 0x44a   :  { %v4740_v29 = vadd.f32 %v3697_v26, %v2959_v18  ;;  %v4744_v30 = vadd.f32 %v3783_v6, %v2967_v19  ;;  %v3699_v31 = vpop.f32.mrb[11].mxu0  ;;  %v3785_v32 = vpop.f32.mrb[11].mxu1 }
 0x44b   :  { %v4741_v34 = vadd.f32 %v3699_v31, %v2963_v22  ;;  %v4745_v45 = vadd.f32 %v3785_v32, %v2971_v23 }
 0x44c   :  { %v3788_v35 = vpack.c.bf16 %v4740_v29, %v4738_v27  ;;  %v3790_v36 = vpack.c.bf16 %v4744_v30, %v4742_v28 }
 0x44d   :  { %v3789_v37 = vpack.c.bf16 %v4741_v34, %v4739_v33  ;;  %v3791_v47 = vpack.c.bf16 %v4745_v45, %v4743_v44 }
 0x44f   :  { %4087 = vmatprep.mubr.bf16.mxu0 %v3789_v37  ;;  %4128 = vmatprep.mubr.bf16.mxu1 %v3791_v47 }
 0x450   :  { %4088 = vmatmul.mubr.bf16.vlgmr.msra.gmra.mrb[12].mxu0 %v3788_v35  ;;  %4129 = vmatmul.mubr.bf16.vlgmr.msra.gmra.mrb[12].mxu1 %v3790_v36 }
 0x523   :  { %v4694_v48 = vpop.f32.mrb[12].mxu0  ;;  %v4716_v38 = vpop.f32.mrb[12].mxu1 }
 0x524   :  { %v4695_v41 = vpop.f32.mrb[13].mxu0  ;;  %v4717_v42 = vpop.f32.mrb[13].mxu1 }
 0x525   :  { %v4696_v43 = vadd.f32 %v4695_v41, %v4694_v48  ;;  %v4718_v46 = vadd.f32 %v4717_v42, %v4716_v38  ;;  %v4697_v49 = vpop.f32.mrb[14].mxu0  ;;  %v4719_v50 = vpop.f32.mrb[14].mxu1 }
 0x526   :  { %v4698_v51 = vpop.f32.mrb[15].mxu0  ;;  %v4720_v52 = vpop.f32.mrb[15].mxu1 }
 0x527   :  { %v4090_v53 = vadd.f32 %v4696_v43, %v4645_v40  ;;  %v4699_v54 = vadd.f32 %v4698_v51, %v4697_v49  ;;  %v4721_v55 = vadd.f32 %v4720_v52, %v4719_v50 }
 0x529   :  { %v4131_v56 = vadd.f32 %v4718_v46, %v4090_v53  ;;  %v4093_v57 = vadd.f32 %v4699_v54, %v4645_v40 }
 0x52b   :  { %4137 = vst [vmem:[#allocation11] sm:$0xff] %v4131_v56  ;;  %v4134_v58 = vadd.f32 %v4721_v55, %v4093_v57 }
 0x52d   :  { %4138 = vst [vmem:[#allocation11 + $0x8] sm:$0xff] %v4134_v58 }
 0x52e   :  { %5684 = shalt.err (!%p5681_p2)
}
 0x52f   :  { %s5685_s16 = scalar_lea.hbm %s5898_s9, 256 }
 0x530   :  { %p5686_p3 = scmp.ne.s32.totalorder %s5898_s9, %s5685_s16  ;;  %p5689_p4 = scmp.lt.u32.totalorder %s5685_s16, %s5898_s9 }
 0x532   :  { %p5691_p5 = pnand %p5689_p4, %p5686_p3 }
 0x534   :  { %5694 = shalt.err (!%p5691_p5)
}
 0x535   :  { %s5716_s21 = smov 128   ;;  %s5717_s22 = smov 8  }
 0x536   :  { %4150 = dma.vmem_to_hbm [thread:$0]  %s4145_s10, 256, %s5898_s9, [#allocation4], %s5716_s21, %s5716_s21, %s5717_s22  }
 0x537   :  { %5701 = dma.done.wait [#allocation4], 256  }
 0x538   :  { %5702 = vsyncadd [#allocation4], 4294967040 }
 0x539   :  { %4154 = vsyncpa [#allocation3], 1 }
 0x53a   :  { %4155 = vsyncpa [#allocation6], 1 }
 0x53b   :  { %4156 = vsyncpa [#allocation9], 1 }
 0x53c   :  { %4157 = vsyncpa [#allocation4], 1 }

</bundles_post_ra>
